<compile_context>
chip_gen: v7x
topology: tpu7x:2x2x1
jax: 0.10.0
libtpu: 0.0.40
codegen_flags: <defaults>
</compile_context>

<pallas_src>
import math
import functools

import jax
import jax.numpy as jnp
from jax import lax
from jax.experimental import pallas as pl
from jax.experimental.pallas import tpu as pltpu


def _layernorm(x, w, b, eps=1e-5):
    # x: (T, E) f32, w/b: (1, E) f32
    mu = jnp.mean(x, axis=-1, keepdims=True)
    xc = x - mu
    var = jnp.mean(xc * xc, axis=-1, keepdims=True)
    return xc * lax.rsqrt(var + eps) * w + b


def _gelu_tanh(x):
    # matches torch.nn.GELU(approximate='tanh')
    c = math.sqrt(2.0 / math.pi)
    return 0.5 * x * (1.0 + jnp.tanh(c * (x + 0.044715 * x * x * x)))


def _sablock_kernel(
    x_ref,
    ln1w_ref, ln1b_ref,
    wqkv_ref, bqkv_ref, wo_ref, bo_ref,
    ln2w_ref, ln2b_ref,
    wfc_ref, bfc_ref, wpr_ref, bpr_ref,
    o_ref,
    ctx_ref,            # (T, E) bf16 VMEM scratch: per-head contexts
    *, nhead,
):
    x = x_ref[...].astype(jnp.float32)          # (T, E), residual kept in f32
    T, E = x.shape
    head_dim = E // nhead
    scale = 1.0 / math.sqrt(head_dim)
    mxu_dtype = wqkv_ref.dtype                  # bf16 weights

    # ---- pre-norm 1 + fused QKV projection ----
    h = _layernorm(x, ln1w_ref[...], ln1b_ref[...])
    qkv = jnp.dot(h.astype(mxu_dtype), wqkv_ref[...],
                  preferred_element_type=jnp.float32) + bqkv_ref[...]   # (T, 3E) f32
    # Fold the attention scale into Q once ((T,E) work, not per-head (T,T)).
    Q = (qkv[:, :E] * scale).astype(mxu_dtype)
    K = qkv[:, E:2 * E].astype(mxu_dtype)
    V = qkv[:, 2 * E:].astype(mxu_dtype)

    # ---- per-head attention, contexts written into a lane-offset scratch ----
    # (static unroll; nhead is small.  Flash/q-tile restructuring is the fix
    #  for large T -- see TODO at the top of the file.)
    for hidx in range(nhead):
        lo = hidx * head_dim
        qh = Q[:, lo:lo + head_dim]             # (T, hd) bf16
        kh = K[:, lo:lo + head_dim]
        vh = V[:, lo:lo + head_dim]
        att = lax.dot_general(
            qh, kh, (((1,), (1,)), ((), ())),
            preferred_element_type=jnp.float32)               # (T, T) f32
        m = jnp.max(att, axis=-1, keepdims=True)
        e = jnp.exp(att - m)                                  # unnormalized probs
        denom = jnp.sum(e, axis=-1, keepdims=True)            # (T, 1)
        oh = jnp.dot(e.astype(mxu_dtype), vh,
                     preferred_element_type=jnp.float32)      # (T, hd)
        oh = oh / denom                                       # exact, deferred norm
        ctx_ref[:, lo:lo + head_dim] = oh.astype(mxu_dtype)

    # ONE dense output projection: full-E MXU contraction.
    attn_out = jnp.dot(ctx_ref[...], wo_ref[...],
                       preferred_element_type=jnp.float32) + bo_ref[...]
    x1 = x + attn_out

    # ---- pre-norm 2 + MLP ----
    h2 = _layernorm(x1, ln2w_ref[...], ln2b_ref[...])
    ff = jnp.dot(h2.astype(mxu_dtype), wfc_ref[...],
                 preferred_element_type=jnp.float32) + bfc_ref[...]       # (T, 2E)
    ff = _gelu_tanh(ff)
    mlp_out = jnp.dot(ff.astype(mxu_dtype), wpr_ref[...],
                      preferred_element_type=jnp.float32) + bpr_ref[...]  # (T, E)

    o_ref[...] = (x1 + mlp_out).astype(o_ref.dtype)


def sablock_pallas(x, params, nhead, *, single_buffer_weights=True):
    (ln1w, ln1b, wq, bq, wk, bk, wv, bv, wo, bo,
     ln2w, ln2b, wfc, bfc, wpr, bpr) = params
    B, T, E = x.shape

    # Shape / divisibility contract (weights must be pre-transposed (in, out)).
    assert E % nhead == 0, "embed_dim must be divisible by nhead"
    assert wq.shape == (E, E) and wk.shape == (E, E)
    assert wv.shape == (E, E) and wo.shape == (E, E)
    assert wfc.shape == (E, 2 * E) and wpr.shape == (2 * E, E)

    # bf16 matmul operands (2x MXU throughput, half the weight DMA/VMEM);
    # LN params and biases stay f32 (added after f32 accumulation).
    bf = jnp.bfloat16
    wqkv = jnp.concatenate([wq, wk, wv], axis=1).astype(bf)    # (E, 3E)
    bqkv = jnp.concatenate([bq, bk, bv], axis=1)               # (1, 3E) f32
    wo_c, wfc_c, wpr_c = wo.astype(bf), wfc.astype(bf), wpr.astype(bf)

    kernel_params = (ln1w, ln1b, wqkv, bqkv, wo_c, bo,
                     ln2w, ln2b, wfc_c, bfc, wpr_c, bpr)

    # Grid-invariant weights/biases: never re-DMA'd over the batch grid, so
    # single-buffer them (halves weight VMEM residency; decisive on v7x 64 MiB).
    def wspec(shape):
        if single_buffer_weights:
            return pl.BlockSpec(shape, lambda b: (0, 0),
                                pipeline_mode=pl.Buffered(1))
        return pl.BlockSpec(shape, lambda b: (0, 0))

    in_specs = [
        pl.BlockSpec((None, T, E), lambda b: (b, 0, 0)),   # x (per-batch tile)
        wspec((1, E)), wspec((1, E)),                      # ln1 w, b
        wspec((E, 3 * E)), wspec((1, 3 * E)),              # fused wqkv, bqkv
        wspec((E, E)), wspec((1, E)),                      # wo, bo
        wspec((1, E)), wspec((1, E)),                      # ln2 w, b
        wspec((E, 2 * E)), wspec((1, 2 * E)),              # w_fc, b_fc
        wspec((2 * E, E)), wspec((1, E)),                  # w_proj, b_proj
    ]
    out_spec = pl.BlockSpec((None, T, E), lambda b: (b, 0, 0))

    # ---- generation-aware VMEM budget ----
    wbuf = 1 if single_buffer_weights else 2
    w_bytes = wbuf * (8 * E * E) * 2                       # bf16 matmul weights
    p_bytes = wbuf * (12 * E) * 4                          # f32 biases + LN params
    io_bytes = 2 * 2 * T * E * x.dtype.itemsize            # double-buffered x/out
    tmp_bytes = (20 * T * E + 2 * T * T + T * E) * 4       # in-kernel f32 temporaries
    est_vmem = w_bytes + p_bytes + io_bytes + tmp_bytes
    try:
        phys_vmem = pltpu.get_tpu_info().vmem_capacity_bytes
    except Exception:
        phys_vmem = 64 * 1024 * 1024                       # conservative: v7x per-TC
    vmem_cap = int(phys_vmem * 0.85)                       # headroom for compiler scratch
    vmem_limit = min(vmem_cap, max(int(est_vmem * 1.3), 32 * 1024 * 1024))

    # ---- cost hint for the surrounding XLA schedule ----
    flops = B * (16 * T * E * E + 4 * T * T * E)
    transcendentals = B * (nhead * T * T + 2 * T * E)      # softmax exp + GELU tanh
    bytes_accessed = (8 * E * E) * 2 + (12 * E) * 4 + 2 * B * T * E * x.dtype.itemsize
    cost = pl.CostEstimate(flops=flops, transcendentals=transcendentals,
                           bytes_accessed=bytes_accessed)

    kernel = functools.partial(_sablock_kernel, nhead=nhead)

    # Note (v7x): grid=(B,) marked "parallel" — keep B >= 2 (ideally even) so
    # both TensorCores get work; the TODO flash q-tile axis covers small B.
    return pl.pallas_call(
        kernel,
        out_shape=jax.ShapeDtypeStruct((B, T, E), x.dtype),
        grid_spec=pltpu.PrefetchScalarGridSpec(
            num_scalar_prefetch=0,
            grid=(B,),
            in_specs=in_specs,
            out_specs=out_spec,
            scratch_shapes=[pltpu.VMEM((T, E), jnp.bfloat16)],   # ctx scratch
        ),
        compiler_params=pltpu.CompilerParams(
            dimension_semantics=("parallel",),
            vmem_limit_bytes=vmem_limit,
        ),
        cost_estimate=cost,
    )(x, *kernel_params)


# -------- pure-JAX f32 reference for validation --------
def sablock_ref(x, params, nhead):
    (ln1w, ln1b, wq, bq, wk, bk, wv, bv, wo, bo,
     ln2w, ln2b, wfc, bfc, wpr, bpr) = params
    B, T, E = x.shape
    hd = E // nhead

    def ln(v, w, b):
        mu = jnp.mean(v, axis=-1, keepdims=True)
        var = jnp.mean((v - mu) ** 2, axis=-1, keepdims=True)
        return (v - mu) / jnp.sqrt(var + 1e-5) * w + b

    h = ln(x, ln1w, ln1b)
    Q = h @ wq + bq
    K = h @ wk + bk
    V = h @ wv + bv
    Qh = Q.reshape(B, T, nhead, hd).transpose(0, 2, 1, 3)
    Kh = K.reshape(B, T, nhead, hd).transpose(0, 2, 1, 3)
    Vh = V.reshape(B, T, nhead, hd).transpose(0, 2, 1, 3)
    att = jnp.einsum('bhqd,bhkd->bhqk', Qh, Kh) / math.sqrt(hd)
    att = jax.nn.softmax(att, axis=-1)
    y = jnp.einsum('bhqk,bhkd->bhqd', att, Vh)
    y = y.transpose(0, 2, 1, 3).reshape(B, T, E)
    x1 = x + (y @ wo + bo)

    h2 = ln(x1, ln2w, ln2b)
    ff = h2 @ wfc + bfc
    c = math.sqrt(2.0 / math.pi)
    ff = 0.5 * ff * (1.0 + jnp.tanh(c * (ff + 0.044715 * ff ** 3)))
    return x1 + (ff @ wpr + bpr)


if __name__ == "__main__":
    B, T, E, nhead = 2, 8, 32, 4

    key = jax.random.PRNGKey(0)
    keys = jax.random.split(key, 16)

    def nrm(k, shape, s=0.05):
        return (s * jax.random.normal(k, shape)).astype(jnp.float32)

    # deterministic synthetic parameters (shapes from SABlock.__init__)
    ln1w = jnp.ones((1, E), jnp.float32)
    ln1b = jnp.zeros((1, E), jnp.float32)
    wq, bq = nrm(keys[0], (E, E)), nrm(keys[1], (1, E))
    wk, bk = nrm(keys[2], (E, E)), nrm(keys[3], (1, E))
    wv, bv = nrm(keys[4], (E, E)), nrm(keys[5], (1, E))
    wo, bo = nrm(keys[6], (E, E)), nrm(keys[7], (1, E))
    ln2w = jnp.ones((1, E), jnp.float32)
    ln2b = jnp.zeros((1, E), jnp.float32)
    wfc, bfc = nrm(keys[8], (E, 2 * E)), nrm(keys[9], (1, 2 * E))
    wpr, bpr = nrm(keys[10], (2 * E, E)), nrm(keys[11], (1, E))

    params = (ln1w, ln1b, wq, bq, wk, bk, wv, bv, wo, bo,
              ln2w, ln2b, wfc, bfc, wpr, bpr)

    x = jax.random.normal(keys[12], (B, T, E), jnp.float32)

    try:
        out = jax.block_until_ready(sablock_pallas(x, params, nhead))
    except Exception:
        # Fallback: some jax builds reject single-buffered (Buffered(1))
        # BlockSpecs -- retry with default double buffering.
        out = jax.block_until_ready(
            sablock_pallas(x, params, nhead, single_buffer_weights=False))

    ref = sablock_ref(x, params, nhead)
    assert out.shape == (B, T, E)
    # bf16 MXU operands vs. pure-f32 reference (softmax normalization is exact).
    assert jnp.allclose(out, ref, atol=2e-2, rtol=2e-2), (
        float(jnp.max(jnp.abs(out - ref))))

    print("KERNEL_OK")
</pallas_src>

<mosaic_0001>
module attributes {stable_mosaic.version = 11 : i64} {
  func.func @_sablock_kernel(%arg0: i32, %arg1: memref<1x8x32xf32, #tpu.memory_space<vmem>>, %arg2: memref<1x32xf32, #tpu.memory_space<vmem>>, %arg3: memref<1x32xf32, #tpu.memory_space<vmem>>, %arg4: memref<32x96xbf16, #tpu.memory_space<vmem>>, %arg5: memref<1x96xf32, #tpu.memory_space<vmem>>, %arg6: memref<32x32xbf16, #tpu.memory_space<vmem>>, %arg7: memref<1x32xf32, #tpu.memory_space<vmem>>, %arg8: memref<1x32xf32, #tpu.memory_space<vmem>>, %arg9: memref<1x32xf32, #tpu.memory_space<vmem>>, %arg10: memref<32x64xbf16, #tpu.memory_space<vmem>>, %arg11: memref<1x64xf32, #tpu.memory_space<vmem>>, %arg12: memref<64x32xbf16, #tpu.memory_space<vmem>>, %arg13: memref<1x32xf32, #tpu.memory_space<vmem>>, %arg14: memref<1x8x32xf32, #tpu.memory_space<vmem>>, %arg15: memref<8x32xbf16, #tpu.memory_space<vmem>>) attributes {dimension_semantics = [#tpu.dimension_semantics<parallel>], iteration_bounds = array<i64: 2>, scalar_prefetch = 0 : i64, scratch_operands = 1 : i64, tpu.core_type = #tpu.core_type<tc>, window_params = [{transform_indices = @transform_0, window_bounds = array<i64: 1, 8, 32>}, {pipeline_mode = #tpu.pipeline_mode<synchronous>, transform_indices = @transform_1, window_bounds = array<i64: 1, 32>}, {pipeline_mode = #tpu.pipeline_mode<synchronous>, transform_indices = @transform_2, window_bounds = array<i64: 1, 32>}, {pipeline_mode = #tpu.pipeline_mode<synchronous>, transform_indices = @transform_3, window_bounds = array<i64: 32, 96>}, {pipeline_mode = #tpu.pipeline_mode<synchronous>, transform_indices = @transform_4, window_bounds = array<i64: 1, 96>}, {pipeline_mode = #tpu.pipeline_mode<synchronous>, transform_indices = @transform_5, window_bounds = array<i64: 32, 32>}, {pipeline_mode = #tpu.pipeline_mode<synchronous>, transform_indices = @transform_6, window_bounds = array<i64: 1, 32>}, {pipeline_mode = #tpu.pipeline_mode<synchronous>, transform_indices = @transform_7, window_bounds = array<i64: 1, 32>}, {pipeline_mode = #tpu.pipeline_mode<synchronous>, transform_indices = @transform_8, window_bounds = array<i64: 1, 32>}, {pipeline_mode = #tpu.pipeline_mode<synchronous>, transform_indices = @transform_9, window_bounds = array<i64: 32, 64>}, {pipeline_mode = #tpu.pipeline_mode<synchronous>, transform_indices = @transform_10, window_bounds = array<i64: 1, 64>}, {pipeline_mode = #tpu.pipeline_mode<synchronous>, transform_indices = @transform_11, window_bounds = array<i64: 64, 32>}, {pipeline_mode = #tpu.pipeline_mode<synchronous>, transform_indices = @transform_12, window_bounds = array<i64: 1, 32>}, {transform_indices = @transform_13, window_bounds = array<i64: 1, 8, 32>}]} {
    %c0 = arith.constant 0 : index
    %c0_0 = arith.constant 0 : index
    %c0_1 = arith.constant 0 : index
    %0 = vector.load %arg1[%c0, %c0_0, %c0_1] : memref<1x8x32xf32, #tpu.memory_space<vmem>>, vector<1x8x32xf32>
    %1 = vector.shape_cast %0 : vector<1x8x32xf32> to vector<8x32xf32>
    %c0_2 = arith.constant 0 : index
    %c0_3 = arith.constant 0 : index
    %2 = vector.load %arg2[%c0_2, %c0_3] : memref<1x32xf32, #tpu.memory_space<vmem>>, vector<1x32xf32>
    %c0_4 = arith.constant 0 : index
    %c0_5 = arith.constant 0 : index
    %3 = vector.load %arg3[%c0_4, %c0_5] : memref<1x32xf32, #tpu.memory_space<vmem>>, vector<1x32xf32>
    %cst = arith.constant dense<0.000000e+00> : vector<8xf32>
    %4 = vector.multi_reduction <add>, %1, %cst [1] : vector<8x32xf32> to vector<8xf32>
    %5 = vector.shape_cast %4 : vector<8xf32> to vector<8x1xf32>
    %cst_6 = arith.constant 3.200000e+01 : f32
    %6 = vector.broadcast %cst_6 : f32 to vector<8x1xf32>
    %7 = arith.divf %5, %6 : vector<8x1xf32>
    %8 = vector.broadcast %7 : vector<8x1xf32> to vector<8x32xf32>
    %9 = arith.subf %1, %8 : vector<8x32xf32>
    %10 = arith.mulf %9, %9 : vector<8x32xf32>
    %cst_7 = arith.constant dense<0.000000e+00> : vector<8xf32>
    %11 = vector.multi_reduction <add>, %10, %cst_7 [1] : vector<8x32xf32> to vector<8xf32>
    %12 = vector.shape_cast %11 : vector<8xf32> to vector<8x1xf32>
    %cst_8 = arith.constant 3.200000e+01 : f32
    %13 = vector.broadcast %cst_8 : f32 to vector<8x1xf32>
    %14 = arith.divf %12, %13 : vector<8x1xf32>
    %cst_9 = arith.constant 9.99999974E-6 : f32
    %15 = vector.broadcast %cst_9 : f32 to vector<8x1xf32>
    %16 = arith.addf %14, %15 : vector<8x1xf32>
    %17 = math.rsqrt %16 : vector<8x1xf32>
    %18 = vector.broadcast %17 : vector<8x1xf32> to vector<8x32xf32>
    %19 = arith.mulf %9, %18 : vector<8x32xf32>
    %20 = vector.broadcast %2 : vector<1x32xf32> to vector<8x32xf32>
    %21 = arith.mulf %19, %20 : vector<8x32xf32>
    %22 = vector.broadcast %3 : vector<1x32xf32> to vector<8x32xf32>
    %23 = arith.addf %21, %22 : vector<8x32xf32>
    %24 = arith.truncf %23 : vector<8x32xf32> to vector<8x32xbf16>
    %c0_10 = arith.constant 0 : index
    %c0_11 = arith.constant 0 : index
    %25 = vector.load %arg4[%c0_10, %c0_11] : memref<32x96xbf16, #tpu.memory_space<vmem>>, vector<32x96xbf16>
    %cst_12 = arith.constant dense<0.000000e+00> : vector<8x96xf32>
    %26 = tpu.matmul %24, %25, %cst_12 {dimension_numbers = #tpu.dot_dimension_numbers<[1], [0], [0], [1], [0, 0, 1, 1], [], []>} : vector<8x32xbf16>, vector<32x96xbf16>, vector<8x96xf32> -> vector<8x96xf32>
    %c0_13 = arith.constant 0 : index
    %c0_14 = arith.constant 0 : index
    %27 = vector.load %arg5[%c0_13, %c0_14] : memref<1x96xf32, #tpu.memory_space<vmem>>, vector<1x96xf32>
    %28 = vector.broadcast %27 : vector<1x96xf32> to vector<8x96xf32>
    %29 = arith.addf %26, %28 : vector<8x96xf32>
    %30 = vector.extract_strided_slice %29 {offsets = [0, 0], sizes = [8, 32], strides = [1, 1]} : vector<8x96xf32> to vector<8x32xf32>
    %cst_15 = arith.constant 0.353553385 : f32
    %31 = vector.broadcast %cst_15 : f32 to vector<8x32xf32>
    %32 = arith.mulf %30, %31 : vector<8x32xf32>
    %33 = arith.truncf %32 : vector<8x32xf32> to vector<8x32xbf16>
    %34 = vector.extract_strided_slice %29 {offsets = [0, 32], sizes = [8, 32], strides = [1, 1]} : vector<8x96xf32> to vector<8x32xf32>
    %35 = arith.truncf %34 : vector<8x32xf32> to vector<8x32xbf16>
    %36 = vector.extract_strided_slice %29 {offsets = [0, 64], sizes = [8, 32], strides = [1, 1]} : vector<8x96xf32> to vector<8x32xf32>
    %37 = arith.truncf %36 : vector<8x32xf32> to vector<8x32xbf16>
    %38 = vector.extract_strided_slice %33 {offsets = [0, 0], sizes = [8, 8], strides = [1, 1]} : vector<8x32xbf16> to vector<8x8xbf16>
    %39 = vector.extract_strided_slice %35 {offsets = [0, 0], sizes = [8, 8], strides = [1, 1]} : vector<8x32xbf16> to vector<8x8xbf16>
    %40 = vector.extract_strided_slice %37 {offsets = [0, 0], sizes = [8, 8], strides = [1, 1]} : vector<8x32xbf16> to vector<8x8xbf16>
    %cst_16 = arith.constant dense<0.000000e+00> : vector<8x8xf32>
    %41 = tpu.matmul %38, %39, %cst_16 {dimension_numbers = #tpu.dot_dimension_numbers<[1], [1], [0], [0], [0, 0, 1, 0], [], []>} : vector<8x8xbf16>, vector<8x8xbf16>, vector<8x8xf32> -> vector<8x8xf32>
    %cst_17 = arith.constant dense<0xFF800000> : vector<8xf32>
    %42 = vector.multi_reduction <maximumf>, %41, %cst_17 [1] : vector<8x8xf32> to vector<8xf32>
    %43 = vector.shape_cast %42 : vector<8xf32> to vector<8x1xf32>
    %44 = vector.broadcast %43 : vector<8x1xf32> to vector<8x8xf32>
    %45 = arith.subf %41, %44 : vector<8x8xf32>
    %46 = math.exp %45 : vector<8x8xf32>
    %cst_18 = arith.constant dense<0.000000e+00> : vector<8xf32>
    %47 = vector.multi_reduction <add>, %46, %cst_18 [1] : vector<8x8xf32> to vector<8xf32>
    %48 = vector.shape_cast %47 : vector<8xf32> to vector<8x1xf32>
    %49 = arith.truncf %46 : vector<8x8xf32> to vector<8x8xbf16>
    %cst_19 = arith.constant dense<0.000000e+00> : vector<8x8xf32>
    %50 = tpu.matmul %49, %40, %cst_19 {dimension_numbers = #tpu.dot_dimension_numbers<[1], [0], [0], [1], [0, 0, 1, 1], [], []>} : vector<8x8xbf16>, vector<8x8xbf16>, vector<8x8xf32> -> vector<8x8xf32>
    %51 = vector.broadcast %48 : vector<8x1xf32> to vector<8x8xf32>
    %52 = arith.divf %50, %51 : vector<8x8xf32>
    %53 = arith.truncf %52 : vector<8x8xf32> to vector<8x8xbf16>
    %c0_20 = arith.constant 0 : index
    %c0_21 = arith.constant 0 : index
    %54 = vector.load %arg15[%c0_20, %c0_21] : memref<8x32xbf16, #tpu.memory_space<vmem>>, vector<8x8xbf16>
    tpu.vector_store %arg15[%c0_20, %c0_21], %53 {strides = array<i32>} : memref<8x32xbf16, #tpu.memory_space<vmem>>, vector<8x8xbf16>,
    %55 = vector.extract_strided_slice %33 {offsets = [0, 8], sizes = [8, 8], strides = [1, 1]} : vector<8x32xbf16> to vector<8x8xbf16>
    %56 = vector.extract_strided_slice %35 {offsets = [0, 8], sizes = [8, 8], strides = [1, 1]} : vector<8x32xbf16> to vector<8x8xbf16>
    %57 = vector.extract_strided_slice %37 {offsets = [0, 8], sizes = [8, 8], strides = [1, 1]} : vector<8x32xbf16> to vector<8x8xbf16>
    %cst_22 = arith.constant dense<0.000000e+00> : vector<8x8xf32>
    %58 = tpu.matmul %55, %56, %cst_22 {dimension_numbers = #tpu.dot_dimension_numbers<[1], [1], [0], [0], [0, 0, 1, 0], [], []>} : vector<8x8xbf16>, vector<8x8xbf16>, vector<8x8xf32> -> vector<8x8xf32>
    %cst_23 = arith.constant dense<0xFF800000> : vector<8xf32>
    %59 = vector.multi_reduction <maximumf>, %58, %cst_23 [1] : vector<8x8xf32> to vector<8xf32>
    %60 = vector.shape_cast %59 : vector<8xf32> to vector<8x1xf32>
    %61 = vector.broadcast %60 : vector<8x1xf32> to vector<8x8xf32>
    %62 = arith.subf %58, %61 : vector<8x8xf32>
    %63 = math.exp %62 : vector<8x8xf32>
    %cst_24 = arith.constant dense<0.000000e+00> : vector<8xf32>
    %64 = vector.multi_reduction <add>, %63, %cst_24 [1] : vector<8x8xf32> to vector<8xf32>
    %65 = vector.shape_cast %64 : vector<8xf32> to vector<8x1xf32>
    %66 = arith.truncf %63 : vector<8x8xf32> to vector<8x8xbf16>
    %cst_25 = arith.constant dense<0.000000e+00> : vector<8x8xf32>
    %67 = tpu.matmul %66, %57, %cst_25 {dimension_numbers = #tpu.dot_dimension_numbers<[1], [0], [0], [1], [0, 0, 1, 1], [], []>} : vector<8x8xbf16>, vector<8x8xbf16>, vector<8x8xf32> -> vector<8x8xf32>
    %68 = vector.broadcast %65 : vector<8x1xf32> to vector<8x8xf32>
    %69 = arith.divf %67, %68 : vector<8x8xf32>
    %70 = arith.truncf %69 : vector<8x8xf32> to vector<8x8xbf16>
    %c0_26 = arith.constant 0 : index
    %c8 = arith.constant 8 : index
    %71 = vector.load %arg15[%c0_26, %c8] : memref<8x32xbf16, #tpu.memory_space<vmem>>, vector<8x8xbf16>
    tpu.vector_store %arg15[%c0_26, %c8], %70 {strides = array<i32>} : memref<8x32xbf16, #tpu.memory_space<vmem>>, vector<8x8xbf16>,
    %72 = vector.extract_strided_slice %33 {offsets = [0, 16], sizes = [8, 8], strides = [1, 1]} : vector<8x32xbf16> to vector<8x8xbf16>
    %73 = vector.extract_strided_slice %35 {offsets = [0, 16], sizes = [8, 8], strides = [1, 1]} : vector<8x32xbf16> to vector<8x8xbf16>
    %74 = vector.extract_strided_slice %37 {offsets = [0, 16], sizes = [8, 8], strides = [1, 1]} : vector<8x32xbf16> to vector<8x8xbf16>
    %cst_27 = arith.constant dense<0.000000e+00> : vector<8x8xf32>
    %75 = tpu.matmul %72, %73, %cst_27 {dimension_numbers = #tpu.dot_dimension_numbers<[1], [1], [0], [0], [0, 0, 1, 0], [], []>} : vector<8x8xbf16>, vector<8x8xbf16>, vector<8x8xf32> -> vector<8x8xf32>
    %cst_28 = arith.constant dense<0xFF800000> : vector<8xf32>
    %76 = vector.multi_reduction <maximumf>, %75, %cst_28 [1] : vector<8x8xf32> to vector<8xf32>
    %77 = vector.shape_cast %76 : vector<8xf32> to vector<8x1xf32>
    %78 = vector.broadcast %77 : vector<8x1xf32> to vector<8x8xf32>
    %79 = arith.subf %75, %78 : vector<8x8xf32>
    %80 = math.exp %79 : vector<8x8xf32>
    %cst_29 = arith.constant dense<0.000000e+00> : vector<8xf32>
    %81 = vector.multi_reduction <add>, %80, %cst_29 [1] : vector<8x8xf32> to vector<8xf32>
    %82 = vector.shape_cast %81 : vector<8xf32> to vector<8x1xf32>
    %83 = arith.truncf %80 : vector<8x8xf32> to vector<8x8xbf16>
    %cst_30 = arith.constant dense<0.000000e+00> : vector<8x8xf32>
    %84 = tpu.matmul %83, %74, %cst_30 {dimension_numbers = #tpu.dot_dimension_numbers<[1], [0], [0], [1], [0, 0, 1, 1], [], []>} : vector<8x8xbf16>, vector<8x8xbf16>, vector<8x8xf32> -> vector<8x8xf32>
    %85 = vector.broadcast %82 : vector<8x1xf32> to vector<8x8xf32>
    %86 = arith.divf %84, %85 : vector<8x8xf32>
    %87 = arith.truncf %86 : vector<8x8xf32> to vector<8x8xbf16>
    %c0_31 = arith.constant 0 : index
    %c16 = arith.constant 16 : index
    %88 = vector.load %arg15[%c0_31, %c16] : memref<8x32xbf16, #tpu.memory_space<vmem>>, vector<8x8xbf16>
    tpu.vector_store %arg15[%c0_31, %c16], %87 {strides = array<i32>} : memref<8x32xbf16, #tpu.memory_space<vmem>>, vector<8x8xbf16>,
    %89 = vector.extract_strided_slice %33 {offsets = [0, 24], sizes = [8, 8], strides = [1, 1]} : vector<8x32xbf16> to vector<8x8xbf16>
    %90 = vector.extract_strided_slice %35 {offsets = [0, 24], sizes = [8, 8], strides = [1, 1]} : vector<8x32xbf16> to vector<8x8xbf16>
    %91 = vector.extract_strided_slice %37 {offsets = [0, 24], sizes = [8, 8], strides = [1, 1]} : vector<8x32xbf16> to vector<8x8xbf16>
    %cst_32 = arith.constant dense<0.000000e+00> : vector<8x8xf32>
    %92 = tpu.matmul %89, %90, %cst_32 {dimension_numbers = #tpu.dot_dimension_numbers<[1], [1], [0], [0], [0, 0, 1, 0], [], []>} : vector<8x8xbf16>, vector<8x8xbf16>, vector<8x8xf32> -> vector<8x8xf32>
    %cst_33 = arith.constant dense<0xFF800000> : vector<8xf32>
    %93 = vector.multi_reduction <maximumf>, %92, %cst_33 [1] : vector<8x8xf32> to vector<8xf32>
    %94 = vector.shape_cast %93 : vector<8xf32> to vector<8x1xf32>
    %95 = vector.broadcast %94 : vector<8x1xf32> to vector<8x8xf32>
    %96 = arith.subf %92, %95 : vector<8x8xf32>
    %97 = math.exp %96 : vector<8x8xf32>
    %cst_34 = arith.constant dense<0.000000e+00> : vector<8xf32>
    %98 = vector.multi_reduction <add>, %97, %cst_34 [1] : vector<8x8xf32> to vector<8xf32>
    %99 = vector.shape_cast %98 : vector<8xf32> to vector<8x1xf32>
    %100 = arith.truncf %97 : vector<8x8xf32> to vector<8x8xbf16>
    %cst_35 = arith.constant dense<0.000000e+00> : vector<8x8xf32>
    %101 = tpu.matmul %100, %91, %cst_35 {dimension_numbers = #tpu.dot_dimension_numbers<[1], [0], [0], [1], [0, 0, 1, 1], [], []>} : vector<8x8xbf16>, vector<8x8xbf16>, vector<8x8xf32> -> vector<8x8xf32>
    %102 = vector.broadcast %99 : vector<8x1xf32> to vector<8x8xf32>
    %103 = arith.divf %101, %102 : vector<8x8xf32>
    %104 = arith.truncf %103 : vector<8x8xf32> to vector<8x8xbf16>
    %c0_36 = arith.constant 0 : index
    %c24 = arith.constant 24 : index
    %105 = vector.load %arg15[%c0_36, %c24] : memref<8x32xbf16, #tpu.memory_space<vmem>>, vector<8x8xbf16>
    tpu.vector_store %arg15[%c0_36, %c24], %104 {strides = array<i32>} : memref<8x32xbf16, #tpu.memory_space<vmem>>, vector<8x8xbf16>,
    %c0_37 = arith.constant 0 : index
    %c0_38 = arith.constant 0 : index
    %106 = vector.load %arg15[%c0_37, %c0_38] : memref<8x32xbf16, #tpu.memory_space<vmem>>, vector<8x32xbf16>
    %c0_39 = arith.constant 0 : index
    %c0_40 = arith.constant 0 : index
    %107 = vector.load %arg6[%c0_39, %c0_40] : memref<32x32xbf16, #tpu.memory_space<vmem>>, vector<32x32xbf16>
    %cst_41 = arith.constant dense<0.000000e+00> : vector<8x32xf32>
    %108 = tpu.matmul %106, %107, %cst_41 {dimension_numbers = #tpu.dot_dimension_numbers<[1], [0], [0], [1], [0, 0, 1, 1], [], []>} : vector<8x32xbf16>, vector<32x32xbf16>, vector<8x32xf32> -> vector<8x32xf32>
    %c0_42 = arith.constant 0 : index
    %c0_43 = arith.constant 0 : index
    %109 = vector.load %arg7[%c0_42, %c0_43] : memref<1x32xf32, #tpu.memory_space<vmem>>, vector<1x32xf32>
    %110 = vector.broadcast %109 : vector<1x32xf32> to vector<8x32xf32>
    %111 = arith.addf %108, %110 : vector<8x32xf32>
    %112 = arith.addf %1, %111 : vector<8x32xf32>
    %c0_44 = arith.constant 0 : index
    %c0_45 = arith.constant 0 : index
    %113 = vector.load %arg8[%c0_44, %c0_45] : memref<1x32xf32, #tpu.memory_space<vmem>>, vector<1x32xf32>
    %c0_46 = arith.constant 0 : index
    %c0_47 = arith.constant 0 : index
    %114 = vector.load %arg9[%c0_46, %c0_47] : memref<1x32xf32, #tpu.memory_space<vmem>>, vector<1x32xf32>
    %cst_48 = arith.constant dense<0.000000e+00> : vector<8xf32>
    %115 = vector.multi_reduction <add>, %112, %cst_48 [1] : vector<8x32xf32> to vector<8xf32>
    %116 = vector.shape_cast %115 : vector<8xf32> to vector<8x1xf32>
    %cst_49 = arith.constant 3.200000e+01 : f32
    %117 = vector.broadcast %cst_49 : f32 to vector<8x1xf32>
    %118 = arith.divf %116, %117 : vector<8x1xf32>
    %119 = vector.broadcast %118 : vector<8x1xf32> to vector<8x32xf32>
    %120 = arith.subf %112, %119 : vector<8x32xf32>
    %121 = arith.mulf %120, %120 : vector<8x32xf32>
    %cst_50 = arith.constant dense<0.000000e+00> : vector<8xf32>
    %122 = vector.multi_reduction <add>, %121, %cst_50 [1] : vector<8x32xf32> to vector<8xf32>
    %123 = vector.shape_cast %122 : vector<8xf32> to vector<8x1xf32>
    %cst_51 = arith.constant 3.200000e+01 : f32
    %124 = vector.broadcast %cst_51 : f32 to vector<8x1xf32>
    %125 = arith.divf %123, %124 : vector<8x1xf32>
    %cst_52 = arith.constant 9.99999974E-6 : f32
    %126 = vector.broadcast %cst_52 : f32 to vector<8x1xf32>
    %127 = arith.addf %125, %126 : vector<8x1xf32>
    %128 = math.rsqrt %127 : vector<8x1xf32>
    %129 = vector.broadcast %128 : vector<8x1xf32> to vector<8x32xf32>
    %130 = arith.mulf %120, %129 : vector<8x32xf32>
    %131 = vector.broadcast %113 : vector<1x32xf32> to vector<8x32xf32>
    %132 = arith.mulf %130, %131 : vector<8x32xf32>
    %133 = vector.broadcast %114 : vector<1x32xf32> to vector<8x32xf32>
    %134 = arith.addf %132, %133 : vector<8x32xf32>
    %135 = arith.truncf %134 : vector<8x32xf32> to vector<8x32xbf16>
    %c0_53 = arith.constant 0 : index
    %c0_54 = arith.constant 0 : index
    %136 = vector.load %arg10[%c0_53, %c0_54] : memref<32x64xbf16, #tpu.memory_space<vmem>>, vector<32x64xbf16>
    %cst_55 = arith.constant dense<0.000000e+00> : vector<8x64xf32>
    %137 = tpu.matmul %135, %136, %cst_55 {dimension_numbers = #tpu.dot_dimension_numbers<[1], [0], [0], [1], [0, 0, 1, 1], [], []>} : vector<8x32xbf16>, vector<32x64xbf16>, vector<8x64xf32> -> vector<8x64xf32>
    %c0_56 = arith.constant 0 : index
    %c0_57 = arith.constant 0 : index
    %138 = vector.load %arg11[%c0_56, %c0_57] : memref<1x64xf32, #tpu.memory_space<vmem>>, vector<1x64xf32>
    %139 = vector.broadcast %138 : vector<1x64xf32> to vector<8x64xf32>
    %140 = arith.addf %137, %139 : vector<8x64xf32>
    %cst_58 = arith.constant 5.000000e-01 : f32
    %141 = vector.broadcast %cst_58 : f32 to vector<8x64xf32>
    %142 = arith.mulf %141, %140 : vector<8x64xf32>
    %cst_59 = arith.constant 4.471500e-02 : f32
    %143 = vector.broadcast %cst_59 : f32 to vector<8x64xf32>
    %144 = arith.mulf %143, %140 : vector<8x64xf32>
    %145 = arith.mulf %144, %140 : vector<8x64xf32>
    %146 = arith.mulf %145, %140 : vector<8x64xf32>
    %147 = arith.addf %140, %146 : vector<8x64xf32>
    %cst_60 = arith.constant 0.797884583 : f32
    %148 = vector.broadcast %cst_60 : f32 to vector<8x64xf32>
    %149 = arith.mulf %148, %147 : vector<8x64xf32>
    %150 = math.tanh %149 : vector<8x64xf32>
    %cst_61 = arith.constant 1.000000e+00 : f32
    %151 = vector.broadcast %cst_61 : f32 to vector<8x64xf32>
    %152 = arith.addf %151, %150 : vector<8x64xf32>
    %153 = arith.mulf %142, %152 : vector<8x64xf32>
    %154 = arith.truncf %153 : vector<8x64xf32> to vector<8x64xbf16>
    %c0_62 = arith.constant 0 : index
    %c0_63 = arith.constant 0 : index
    %155 = vector.load %arg12[%c0_62, %c0_63] : memref<64x32xbf16, #tpu.memory_space<vmem>>, vector<64x32xbf16>
    %cst_64 = arith.constant dense<0.000000e+00> : vector<8x32xf32>
    %156 = tpu.matmul %154, %155, %cst_64 {dimension_numbers = #tpu.dot_dimension_numbers<[1], [0], [0], [1], [0, 0, 1, 1], [], []>} : vector<8x64xbf16>, vector<64x32xbf16>, vector<8x32xf32> -> vector<8x32xf32>
    %c0_65 = arith.constant 0 : index
    %c0_66 = arith.constant 0 : index
    %157 = vector.load %arg13[%c0_65, %c0_66] : memref<1x32xf32, #tpu.memory_space<vmem>>, vector<1x32xf32>
    %158 = vector.broadcast %157 : vector<1x32xf32> to vector<8x32xf32>
    %159 = arith.addf %156, %158 : vector<8x32xf32>
    %160 = arith.addf %112, %159 : vector<8x32xf32>
    %c0_67 = arith.constant 0 : index
    %c0_68 = arith.constant 0 : index
    %c0_69 = arith.constant 0 : index
    %161 = vector.load %arg14[%c0_67, %c0_68, %c0_69] : memref<1x8x32xf32, #tpu.memory_space<vmem>>, vector<1x8x32xf32>
    %162 = vector.shape_cast %161 : vector<1x8x32xf32> to vector<8x32xf32>
    %163 = vector.shape_cast %160 : vector<8x32xf32> to vector<1x8x32xf32>
    tpu.vector_store %arg14[%c0_67, %c0_68, %c0_69], %163 {strides = array<i32>} : memref<1x8x32xf32, #tpu.memory_space<vmem>>, vector<1x8x32xf32>,
    return
  }
  func.func @transform_0(%arg0: i32) -> (i32, i32, i32) {
    %c0_i32 = arith.constant 0 : i32
    %c0_i32_0 = arith.constant 0 : i32
    %c0_i32_1 = arith.constant 0 : i32
    return %arg0, %c0_i32, %c0_i32_0 : i32, i32, i32
  }
  func.func @transform_1(%arg0: i32) -> (i32, i32) {
    %c0_i32 = arith.constant 0 : i32
    %c0_i32_0 = arith.constant 0 : i32
    %c0_i32_1 = arith.constant 0 : i32
    return %c0_i32, %c0_i32_0 : i32, i32
  }
  func.func @transform_2(%arg0: i32) -> (i32, i32) {
    %c0_i32 = arith.constant 0 : i32
    %c0_i32_0 = arith.constant 0 : i32
    %c0_i32_1 = arith.constant 0 : i32
    return %c0_i32, %c0_i32_0 : i32, i32
  }
  func.func @transform_3(%arg0: i32) -> (i32, i32) {
    %c0_i32 = arith.constant 0 : i32
    %c0_i32_0 = arith.constant 0 : i32
    %c0_i32_1 = arith.constant 0 : i32
    return %c0_i32, %c0_i32_0 : i32, i32
  }
  func.func @transform_4(%arg0: i32) -> (i32, i32) {
    %c0_i32 = arith.constant 0 : i32
    %c0_i32_0 = arith.constant 0 : i32
    %c0_i32_1 = arith.constant 0 : i32
    return %c0_i32, %c0_i32_0 : i32, i32
  }
  func.func @transform_5(%arg0: i32) -> (i32, i32) {
    %c0_i32 = arith.constant 0 : i32
    %c0_i32_0 = arith.constant 0 : i32
    %c0_i32_1 = arith.constant 0 : i32
    return %c0_i32, %c0_i32_0 : i32, i32
  }
  func.func @transform_6(%arg0: i32) -> (i32, i32) {
    %c0_i32 = arith.constant 0 : i32
    %c0_i32_0 = arith.constant 0 : i32
    %c0_i32_1 = arith.constant 0 : i32
    return %c0_i32, %c0_i32_0 : i32, i32
  }
  func.func @transform_7(%arg0: i32) -> (i32, i32) {
    %c0_i32 = arith.constant 0 : i32
    %c0_i32_0 = arith.constant 0 : i32
    %c0_i32_1 = arith.constant 0 : i32
    return %c0_i32, %c0_i32_0 : i32, i32
  }
  func.func @transform_8(%arg0: i32) -> (i32, i32) {
    %c0_i32 = arith.constant 0 : i32
    %c0_i32_0 = arith.constant 0 : i32
    %c0_i32_1 = arith.constant 0 : i32
    return %c0_i32, %c0_i32_0 : i32, i32
  }
  func.func @transform_9(%arg0: i32) -> (i32, i32) {
    %c0_i32 = arith.constant 0 : i32
    %c0_i32_0 = arith.constant 0 : i32
    %c0_i32_1 = arith.constant 0 : i32
    return %c0_i32, %c0_i32_0 : i32, i32
  }
  func.func @transform_10(%arg0: i32) -> (i32, i32) {
    %c0_i32 = arith.constant 0 : i32
    %c0_i32_0 = arith.constant 0 : i32
    %c0_i32_1 = arith.constant 0 : i32
    return %c0_i32, %c0_i32_0 : i32, i32
  }
  func.func @transform_11(%arg0: i32) -> (i32, i32) {
    %c0_i32 = arith.constant 0 : i32
    %c0_i32_0 = arith.constant 0 : i32
    %c0_i32_1 = arith.constant 0 : i32
    return %c0_i32, %c0_i32_0 : i32, i32
  }
  func.func @transform_12(%arg0: i32) -> (i32, i32) {
    %c0_i32 = arith.constant 0 : i32
    %c0_i32_0 = arith.constant 0 : i32
    %c0_i32_1 = arith.constant 0 : i32
    return %c0_i32, %c0_i32_0 : i32, i32
  }
  func.func @transform_13(%arg0: i32) -> (i32, i32, i32) {
    %c0_i32 = arith.constant 0 : i32
    %c0_i32_0 = arith.constant 0 : i32
    %c0_i32_1 = arith.constant 0 : i32
    return %arg0, %c0_i32, %c0_i32_0 : i32, i32, i32
  }
}

module attributes {stable_mosaic.version = 11 : i64} {
  func.func @_sablock_kernel(%arg0: i32, %arg1: memref<1x8x32xf32, #tpu.memory_space<vmem>>, %arg2: memref<1x32xf32, #tpu.memory_space<vmem>>, %arg3: memref<1x32xf32, #tpu.memory_space<vmem>>, %arg4: memref<32x96xbf16, #tpu.memory_space<vmem>>, %arg5: memref<1x96xf32, #tpu.memory_space<vmem>>, %arg6: memref<32x32xbf16, #tpu.memory_space<vmem>>, %arg7: memref<1x32xf32, #tpu.memory_space<vmem>>, %arg8: memref<1x32xf32, #tpu.memory_space<vmem>>, %arg9: memref<1x32xf32, #tpu.memory_space<vmem>>, %arg10: memref<32x64xbf16, #tpu.memory_space<vmem>>, %arg11: memref<1x64xf32, #tpu.memory_space<vmem>>, %arg12: memref<64x32xbf16, #tpu.memory_space<vmem>>, %arg13: memref<1x32xf32, #tpu.memory_space<vmem>>, %arg14: memref<1x8x32xf32, #tpu.memory_space<vmem>>, %arg15: memref<8x32xbf16, #tpu.memory_space<vmem>>) attributes {dimension_semantics = [#tpu.dimension_semantics<parallel>], iteration_bounds = array<i64: 2>, scalar_prefetch = 0 : i64, scratch_operands = 1 : i64, tpu.core_type = #tpu.core_type<tc>, window_params = [{transform_indices = @transform_0, window_bounds = array<i64: 1, 8, 32>}, {pipeline_mode = #tpu.pipeline_mode<synchronous>, transform_indices = @transform_1, window_bounds = array<i64: 1, 32>}, {pipeline_mode = #tpu.pipeline_mode<synchronous>, transform_indices = @transform_2, window_bounds = array<i64: 1, 32>}, {pipeline_mode = #tpu.pipeline_mode<synchronous>, transform_indices = @transform_3, window_bounds = array<i64: 32, 96>}, {pipeline_mode = #tpu.pipeline_mode<synchronous>, transform_indices = @transform_4, window_bounds = array<i64: 1, 96>}, {pipeline_mode = #tpu.pipeline_mode<synchronous>, transform_indices = @transform_5, window_bounds = array<i64: 32, 32>}, {pipeline_mode = #tpu.pipeline_mode<synchronous>, transform_indices = @transform_6, window_bounds = array<i64: 1, 32>}, {pipeline_mode = #tpu.pipeline_mode<synchronous>, transform_indices = @transform_7, window_bounds = array<i64: 1, 32>}, {pipeline_mode = #tpu.pipeline_mode<synchronous>, transform_indices = @transform_8, window_bounds = array<i64: 1, 32>}, {pipeline_mode = #tpu.pipeline_mode<synchronous>, transform_indices = @transform_9, window_bounds = array<i64: 32, 64>}, {pipeline_mode = #tpu.pipeline_mode<synchronous>, transform_indices = @transform_10, window_bounds = array<i64: 1, 64>}, {pipeline_mode = #tpu.pipeline_mode<synchronous>, transform_indices = @transform_11, window_bounds = array<i64: 64, 32>}, {pipeline_mode = #tpu.pipeline_mode<synchronous>, transform_indices = @transform_12, window_bounds = array<i64: 1, 32>}, {transform_indices = @transform_13, window_bounds = array<i64: 1, 8, 32>}]} {
    %c0 = arith.constant 0 : index
    %c0_0 = arith.constant 0 : index
    %c0_1 = arith.constant 0 : index
    %0 = vector.load %arg1[%c0, %c0_0, %c0_1] : memref<1x8x32xf32, #tpu.memory_space<vmem>>, vector<1x8x32xf32>
    %1 = vector.shape_cast %0 : vector<1x8x32xf32> to vector<8x32xf32>
    %c0_2 = arith.constant 0 : index
    %c0_3 = arith.constant 0 : index
    %2 = vector.load %arg2[%c0_2, %c0_3] : memref<1x32xf32, #tpu.memory_space<vmem>>, vector<1x32xf32>
    %c0_4 = arith.constant 0 : index
    %c0_5 = arith.constant 0 : index
    %3 = vector.load %arg3[%c0_4, %c0_5] : memref<1x32xf32, #tpu.memory_space<vmem>>, vector<1x32xf32>
    %cst = arith.constant dense<0.000000e+00> : vector<8xf32>
    %4 = vector.multi_reduction <add>, %1, %cst [1] : vector<8x32xf32> to vector<8xf32>
    %5 = vector.shape_cast %4 : vector<8xf32> to vector<8x1xf32>
    %cst_6 = arith.constant 3.200000e+01 : f32
    %6 = vector.broadcast %cst_6 : f32 to vector<8x1xf32>
    %7 = arith.divf %5, %6 : vector<8x1xf32>
    %8 = vector.broadcast %7 : vector<8x1xf32> to vector<8x32xf32>
    %9 = arith.subf %1, %8 : vector<8x32xf32>
    %10 = arith.mulf %9, %9 : vector<8x32xf32>
    %cst_7 = arith.constant dense<0.000000e+00> : vector<8xf32>
    %11 = vector.multi_reduction <add>, %10, %cst_7 [1] : vector<8x32xf32> to vector<8xf32>
    %12 = vector.shape_cast %11 : vector<8xf32> to vector<8x1xf32>
    %cst_8 = arith.constant 3.200000e+01 : f32
    %13 = vector.broadcast %cst_8 : f32 to vector<8x1xf32>
    %14 = arith.divf %12, %13 : vector<8x1xf32>
    %cst_9 = arith.constant 9.99999974E-6 : f32
    %15 = vector.broadcast %cst_9 : f32 to vector<8x1xf32>
    %16 = arith.addf %14, %15 : vector<8x1xf32>
    %17 = math.rsqrt %16 : vector<8x1xf32>
    %18 = vector.broadcast %17 : vector<8x1xf32> to vector<8x32xf32>
    %19 = arith.mulf %9, %18 : vector<8x32xf32>
    %20 = vector.broadcast %2 : vector<1x32xf32> to vector<8x32xf32>
    %21 = arith.mulf %19, %20 : vector<8x32xf32>
    %22 = vector.broadcast %3 : vector<1x32xf32> to vector<8x32xf32>
    %23 = arith.addf %21, %22 : vector<8x32xf32>
    %24 = arith.truncf %23 : vector<8x32xf32> to vector<8x32xbf16>
    %c0_10 = arith.constant 0 : index
    %c0_11 = arith.constant 0 : index
    %25 = vector.load %arg4[%c0_10, %c0_11] : memref<32x96xbf16, #tpu.memory_space<vmem>>, vector<32x96xbf16>
    %cst_12 = arith.constant dense<0.000000e+00> : vector<8x96xf32>
    %26 = tpu.matmul %24, %25, %cst_12 {dimension_numbers = #tpu.dot_dimension_numbers<[1], [0], [0], [1], [0, 0, 1, 1], [], []>} : vector<8x32xbf16>, vector<32x96xbf16>, vector<8x96xf32> -> vector<8x96xf32>
    %c0_13 = arith.constant 0 : index
    %c0_14 = arith.constant 0 : index
    %27 = vector.load %arg5[%c0_13, %c0_14] : memref<1x96xf32, #tpu.memory_space<vmem>>, vector<1x96xf32>
    %28 = vector.broadcast %27 : vector<1x96xf32> to vector<8x96xf32>
    %29 = arith.addf %26, %28 : vector<8x96xf32>
    %30 = vector.extract_strided_slice %29 {offsets = [0, 0], sizes = [8, 32], strides = [1, 1]} : vector<8x96xf32> to vector<8x32xf32>
    %cst_15 = arith.constant 0.353553385 : f32
    %31 = vector.broadcast %cst_15 : f32 to vector<8x32xf32>
    %32 = arith.mulf %30, %31 : vector<8x32xf32>
    %33 = arith.truncf %32 : vector<8x32xf32> to vector<8x32xbf16>
    %34 = vector.extract_strided_slice %29 {offsets = [0, 32], sizes = [8, 32], strides = [1, 1]} : vector<8x96xf32> to vector<8x32xf32>
    %35 = arith.truncf %34 : vector<8x32xf32> to vector<8x32xbf16>
    %36 = vector.extract_strided_slice %29 {offsets = [0, 64], sizes = [8, 32], strides = [1, 1]} : vector<8x96xf32> to vector<8x32xf32>
    %37 = arith.truncf %36 : vector<8x32xf32> to vector<8x32xbf16>
    %38 = vector.extract_strided_slice %33 {offsets = [0, 0], sizes = [8, 8], strides = [1, 1]} : vector<8x32xbf16> to vector<8x8xbf16>
    %39 = vector.extract_strided_slice %35 {offsets = [0, 0], sizes = [8, 8], strides = [1, 1]} : vector<8x32xbf16> to vector<8x8xbf16>
    %40 = vector.extract_strided_slice %37 {offsets = [0, 0], sizes = [8, 8], strides = [1, 1]} : vector<8x32xbf16> to vector<8x8xbf16>
    %cst_16 = arith.constant dense<0.000000e+00> : vector<8x8xf32>
    %41 = tpu.matmul %38, %39, %cst_16 {dimension_numbers = #tpu.dot_dimension_numbers<[1], [1], [0], [0], [0, 0, 1, 0], [], []>} : vector<8x8xbf16>, vector<8x8xbf16>, vector<8x8xf32> -> vector<8x8xf32>
    %cst_17 = arith.constant dense<0xFF800000> : vector<8xf32>
    %42 = vector.multi_reduction <maximumf>, %41, %cst_17 [1] : vector<8x8xf32> to vector<8xf32>
    %43 = vector.shape_cast %42 : vector<8xf32> to vector<8x1xf32>
    %44 = vector.broadcast %43 : vector<8x1xf32> to vector<8x8xf32>
    %45 = arith.subf %41, %44 : vector<8x8xf32>
    %46 = math.exp %45 : vector<8x8xf32>
    %cst_18 = arith.constant dense<0.000000e+00> : vector<8xf32>
    %47 = vector.multi_reduction <add>, %46, %cst_18 [1] : vector<8x8xf32> to vector<8xf32>
    %48 = vector.shape_cast %47 : vector<8xf32> to vector<8x1xf32>
    %49 = arith.truncf %46 : vector<8x8xf32> to vector<8x8xbf16>
    %cst_19 = arith.constant dense<0.000000e+00> : vector<8x8xf32>
    %50 = tpu.matmul %49, %40, %cst_19 {dimension_numbers = #tpu.dot_dimension_numbers<[1], [0], [0], [1], [0, 0, 1, 1], [], []>} : vector<8x8xbf16>, vector<8x8xbf16>, vector<8x8xf32> -> vector<8x8xf32>
    %51 = vector.broadcast %48 : vector<8x1xf32> to vector<8x8xf32>
    %52 = arith.divf %50, %51 : vector<8x8xf32>
    %53 = arith.truncf %52 : vector<8x8xf32> to vector<8x8xbf16>
    %c0_20 = arith.constant 0 : index
    %c0_21 = arith.constant 0 : index
    %54 = vector.load %arg15[%c0_20, %c0_21] : memref<8x32xbf16, #tpu.memory_space<vmem>>, vector<8x8xbf16>
    tpu.vector_store %arg15[%c0_20, %c0_21], %53 {strides = array<i32>} : memref<8x32xbf16, #tpu.memory_space<vmem>>, vector<8x8xbf16>,
    %55 = vector.extract_strided_slice %33 {offsets = [0, 8], sizes = [8, 8], strides = [1, 1]} : vector<8x32xbf16> to vector<8x8xbf16>
    %56 = vector.extract_strided_slice %35 {offsets = [0, 8], sizes = [8, 8], strides = [1, 1]} : vector<8x32xbf16> to vector<8x8xbf16>
    %57 = vector.extract_strided_slice %37 {offsets = [0, 8], sizes = [8, 8], strides = [1, 1]} : vector<8x32xbf16> to vector<8x8xbf16>
    %cst_22 = arith.constant dense<0.000000e+00> : vector<8x8xf32>
    %58 = tpu.matmul %55, %56, %cst_22 {dimension_numbers = #tpu.dot_dimension_numbers<[1], [1], [0], [0], [0, 0, 1, 0], [], []>} : vector<8x8xbf16>, vector<8x8xbf16>, vector<8x8xf32> -> vector<8x8xf32>
    %cst_23 = arith.constant dense<0xFF800000> : vector<8xf32>
    %59 = vector.multi_reduction <maximumf>, %58, %cst_23 [1] : vector<8x8xf32> to vector<8xf32>
    %60 = vector.shape_cast %59 : vector<8xf32> to vector<8x1xf32>
    %61 = vector.broadcast %60 : vector<8x1xf32> to vector<8x8xf32>
    %62 = arith.subf %58, %61 : vector<8x8xf32>
    %63 = math.exp %62 : vector<8x8xf32>
    %cst_24 = arith.constant dense<0.000000e+00> : vector<8xf32>
    %64 = vector.multi_reduction <add>, %63, %cst_24 [1] : vector<8x8xf32> to vector<8xf32>
    %65 = vector.shape_cast %64 : vector<8xf32> to vector<8x1xf32>
    %66 = arith.truncf %63 : vector<8x8xf32> to vector<8x8xbf16>
    %cst_25 = arith.constant dense<0.000000e+00> : vector<8x8xf32>
    %67 = tpu.matmul %66, %57, %cst_25 {dimension_numbers = #tpu.dot_dimension_numbers<[1], [0], [0], [1], [0, 0, 1, 1], [], []>} : vector<8x8xbf16>, vector<8x8xbf16>, vector<8x8xf32> -> vector<8x8xf32>
    %68 = vector.broadcast %65 : vector<8x1xf32> to vector<8x8xf32>
    %69 = arith.divf %67, %68 : vector<8x8xf32>
    %70 = arith.truncf %69 : vector<8x8xf32> to vector<8x8xbf16>
    %c0_26 = arith.constant 0 : index
    %c8 = arith.constant 8 : index
    %71 = vector.load %arg15[%c0_26, %c8] : memref<8x32xbf16, #tpu.memory_space<vmem>>, vector<8x8xbf16>
    tpu.vector_store %arg15[%c0_26, %c8], %70 {strides = array<i32>} : memref<8x32xbf16, #tpu.memory_space<vmem>>, vector<8x8xbf16>,
    %72 = vector.extract_strided_slice %33 {offsets = [0, 16], sizes = [8, 8], strides = [1, 1]} : vector<8x32xbf16> to vector<8x8xbf16>
    %73 = vector.extract_strided_slice %35 {offsets = [0, 16], sizes = [8, 8], strides = [1, 1]} : vector<8x32xbf16> to vector<8x8xbf16>
    %74 = vector.extract_strided_slice %37 {offsets = [0, 16], sizes = [8, 8], strides = [1, 1]} : vector<8x32xbf16> to vector<8x8xbf16>
    %cst_27 = arith.constant dense<0.000000e+00> : vector<8x8xf32>
    %75 = tpu.matmul %72, %73, %cst_27 {dimension_numbers = #tpu.dot_dimension_numbers<[1], [1], [0], [0], [0, 0, 1, 0], [], []>} : vector<8x8xbf16>, vector<8x8xbf16>, vector<8x8xf32> -> vector<8x8xf32>
    %cst_28 = arith.constant dense<0xFF800000> : vector<8xf32>
    %76 = vector.multi_reduction <maximumf>, %75, %cst_28 [1] : vector<8x8xf32> to vector<8xf32>
    %77 = vector.shape_cast %76 : vector<8xf32> to vector<8x1xf32>
    %78 = vector.broadcast %77 : vector<8x1xf32> to vector<8x8xf32>
    %79 = arith.subf %75, %78 : vector<8x8xf32>
    %80 = math.exp %79 : vector<8x8xf32>
    %cst_29 = arith.constant dense<0.000000e+00> : vector<8xf32>
    %81 = vector.multi_reduction <add>, %80, %cst_29 [1] : vector<8x8xf32> to vector<8xf32>
    %82 = vector.shape_cast %81 : vector<8xf32> to vector<8x1xf32>
    %83 = arith.truncf %80 : vector<8x8xf32> to vector<8x8xbf16>
    %cst_30 = arith.constant dense<0.000000e+00> : vector<8x8xf32>
    %84 = tpu.matmul %83, %74, %cst_30 {dimension_numbers = #tpu.dot_dimension_numbers<[1], [0], [0], [1], [0, 0, 1, 1], [], []>} : vector<8x8xbf16>, vector<8x8xbf16>, vector<8x8xf32> -> vector<8x8xf32>
    %85 = vector.broadcast %82 : vector<8x1xf32> to vector<8x8xf32>
    %86 = arith.divf %84, %85 : vector<8x8xf32>
    %87 = arith.truncf %86 : vector<8x8xf32> to vector<8x8xbf16>
    %c0_31 = arith.constant 0 : index
    %c16 = arith.constant 16 : index
    %88 = vector.load %arg15[%c0_31, %c16] : memref<8x32xbf16, #tpu.memory_space<vmem>>, vector<8x8xbf16>
    tpu.vector_store %arg15[%c0_31, %c16], %87 {strides = array<i32>} : memref<8x32xbf16, #tpu.memory_space<vmem>>, vector<8x8xbf16>,
    %89 = vector.extract_strided_slice %33 {offsets = [0, 24], sizes = [8, 8], strides = [1, 1]} : vector<8x32xbf16> to vector<8x8xbf16>
    %90 = vector.extract_strided_slice %35 {offsets = [0, 24], sizes = [8, 8], strides = [1, 1]} : vector<8x32xbf16> to vector<8x8xbf16>
    %91 = vector.extract_strided_slice %37 {offsets = [0, 24], sizes = [8, 8], strides = [1, 1]} : vector<8x32xbf16> to vector<8x8xbf16>
    %cst_32 = arith.constant dense<0.000000e+00> : vector<8x8xf32>
    %92 = tpu.matmul %89, %90, %cst_32 {dimension_numbers = #tpu.dot_dimension_numbers<[1], [1], [0], [0], [0, 0, 1, 0], [], []>} : vector<8x8xbf16>, vector<8x8xbf16>, vector<8x8xf32> -> vector<8x8xf32>
    %cst_33 = arith.constant dense<0xFF800000> : vector<8xf32>
    %93 = vector.multi_reduction <maximumf>, %92, %cst_33 [1] : vector<8x8xf32> to vector<8xf32>
    %94 = vector.shape_cast %93 : vector<8xf32> to vector<8x1xf32>
    %95 = vector.broadcast %94 : vector<8x1xf32> to vector<8x8xf32>
    %96 = arith.subf %92, %95 : vector<8x8xf32>
    %97 = math.exp %96 : vector<8x8xf32>
    %cst_34 = arith.constant dense<0.000000e+00> : vector<8xf32>
    %98 = vector.multi_reduction <add>, %97, %cst_34 [1] : vector<8x8xf32> to vector<8xf32>
    %99 = vector.shape_cast %98 : vector<8xf32> to vector<8x1xf32>
    %100 = arith.truncf %97 : vector<8x8xf32> to vector<8x8xbf16>
    %cst_35 = arith.constant dense<0.000000e+00> : vector<8x8xf32>
    %101 = tpu.matmul %100, %91, %cst_35 {dimension_numbers = #tpu.dot_dimension_numbers<[1], [0], [0], [1], [0, 0, 1, 1], [], []>} : vector<8x8xbf16>, vector<8x8xbf16>, vector<8x8xf32> -> vector<8x8xf32>
    %102 = vector.broadcast %99 : vector<8x1xf32> to vector<8x8xf32>
    %103 = arith.divf %101, %102 : vector<8x8xf32>
    %104 = arith.truncf %103 : vector<8x8xf32> to vector<8x8xbf16>
    %c0_36 = arith.constant 0 : index
    %c24 = arith.constant 24 : index
    %105 = vector.load %arg15[%c0_36, %c24] : memref<8x32xbf16, #tpu.memory_space<vmem>>, vector<8x8xbf16>
    tpu.vector_store %arg15[%c0_36, %c24], %104 {strides = array<i32>} : memref<8x32xbf16, #tpu.memory_space<vmem>>, vector<8x8xbf16>,
    %c0_37 = arith.constant 0 : index
    %c0_38 = arith.constant 0 : index
    %106 = vector.load %arg15[%c0_37, %c0_38] : memref<8x32xbf16, #tpu.memory_space<vmem>>, vector<8x32xbf16>
    %c0_39 = arith.constant 0 : index
    %c0_40 = arith.constant 0 : index
    %107 = vector.load %arg6[%c0_39, %c0_40] : memref<32x32xbf16, #tpu.memory_space<vmem>>, vector<32x32xbf16>
    %cst_41 = arith.constant dense<0.000000e+00> : vector<8x32xf32>
    %108 = tpu.matmul %106, %107, %cst_41 {dimension_numbers = #tpu.dot_dimension_numbers<[1], [0], [0], [1], [0, 0, 1, 1], [], []>} : vector<8x32xbf16>, vector<32x32xbf16>, vector<8x32xf32> -> vector<8x32xf32>
    %c0_42 = arith.constant 0 : index
    %c0_43 = arith.constant 0 : index
    %109 = vector.load %arg7[%c0_42, %c0_43] : memref<1x32xf32, #tpu.memory_space<vmem>>, vector<1x32xf32>
    %110 = vector.broadcast %109 : vector<1x32xf32> to vector<8x32xf32>
    %111 = arith.addf %108, %110 : vector<8x32xf32>
    %112 = arith.addf %1, %111 : vector<8x32xf32>
    %c0_44 = arith.constant 0 : index
    %c0_45 = arith.constant 0 : index
    %113 = vector.load %arg8[%c0_44, %c0_45] : memref<1x32xf32, #tpu.memory_space<vmem>>, vector<1x32xf32>
    %c0_46 = arith.constant 0 : index
    %c0_47 = arith.constant 0 : index
    %114 = vector.load %arg9[%c0_46, %c0_47] : memref<1x32xf32, #tpu.memory_space<vmem>>, vector<1x32xf32>
    %cst_48 = arith.constant dense<0.000000e+00> : vector<8xf32>
    %115 = vector.multi_reduction <add>, %112, %cst_48 [1] : vector<8x32xf32> to vector<8xf32>
    %116 = vector.shape_cast %115 : vector<8xf32> to vector<8x1xf32>
    %cst_49 = arith.constant 3.200000e+01 : f32
    %117 = vector.broadcast %cst_49 : f32 to vector<8x1xf32>
    %118 = arith.divf %116, %117 : vector<8x1xf32>
    %119 = vector.broadcast %118 : vector<8x1xf32> to vector<8x32xf32>
    %120 = arith.subf %112, %119 : vector<8x32xf32>
    %121 = arith.mulf %120, %120 : vector<8x32xf32>
    %cst_50 = arith.constant dense<0.000000e+00> : vector<8xf32>
    %122 = vector.multi_reduction <add>, %121, %cst_50 [1] : vector<8x32xf32> to vector<8xf32>
    %123 = vector.shape_cast %122 : vector<8xf32> to vector<8x1xf32>
    %cst_51 = arith.constant 3.200000e+01 : f32
    %124 = vector.broadcast %cst_51 : f32 to vector<8x1xf32>
    %125 = arith.divf %123, %124 : vector<8x1xf32>
    %cst_52 = arith.constant 9.99999974E-6 : f32
    %126 = vector.broadcast %cst_52 : f32 to vector<8x1xf32>
    %127 = arith.addf %125, %126 : vector<8x1xf32>
    %128 = math.rsqrt %127 : vector<8x1xf32>
    %129 = vector.broadcast %128 : vector<8x1xf32> to vector<8x32xf32>
    %130 = arith.mulf %120, %129 : vector<8x32xf32>
    %131 = vector.broadcast %113 : vector<1x32xf32> to vector<8x32xf32>
    %132 = arith.mulf %130, %131 : vector<8x32xf32>
    %133 = vector.broadcast %114 : vector<1x32xf32> to vector<8x32xf32>
    %134 = arith.addf %132, %133 : vector<8x32xf32>
    %135 = arith.truncf %134 : vector<8x32xf32> to vector<8x32xbf16>
    %c0_53 = arith.constant 0 : index
    %c0_54 = arith.constant 0 : index
    %136 = vector.load %arg10[%c0_53, %c0_54] : memref<32x64xbf16, #tpu.memory_space<vmem>>, vector<32x64xbf16>
    %cst_55 = arith.constant dense<0.000000e+00> : vector<8x64xf32>
    %137 = tpu.matmul %135, %136, %cst_55 {dimension_numbers = #tpu.dot_dimension_numbers<[1], [0], [0], [1], [0, 0, 1, 1], [], []>} : vector<8x32xbf16>, vector<32x64xbf16>, vector<8x64xf32> -> vector<8x64xf32>
    %c0_56 = arith.constant 0 : index
    %c0_57 = arith.constant 0 : index
    %138 = vector.load %arg11[%c0_56, %c0_57] : memref<1x64xf32, #tpu.memory_space<vmem>>, vector<1x64xf32>
    %139 = vector.broadcast %138 : vector<1x64xf32> to vector<8x64xf32>
    %140 = arith.addf %137, %139 : vector<8x64xf32>
    %cst_58 = arith.constant 5.000000e-01 : f32
    %141 = vector.broadcast %cst_58 : f32 to vector<8x64xf32>
    %142 = arith.mulf %141, %140 : vector<8x64xf32>
    %cst_59 = arith.constant 4.471500e-02 : f32
    %143 = vector.broadcast %cst_59 : f32 to vector<8x64xf32>
    %144 = arith.mulf %143, %140 : vector<8x64xf32>
    %145 = arith.mulf %144, %140 : vector<8x64xf32>
    %146 = arith.mulf %145, %140 : vector<8x64xf32>
    %147 = arith.addf %140, %146 : vector<8x64xf32>
    %cst_60 = arith.constant 0.797884583 : f32
    %148 = vector.broadcast %cst_60 : f32 to vector<8x64xf32>
    %149 = arith.mulf %148, %147 : vector<8x64xf32>
    %150 = math.tanh %149 : vector<8x64xf32>
    %cst_61 = arith.constant 1.000000e+00 : f32
    %151 = vector.broadcast %cst_61 : f32 to vector<8x64xf32>
    %152 = arith.addf %151, %150 : vector<8x64xf32>
    %153 = arith.mulf %142, %152 : vector<8x64xf32>
    %154 = arith.truncf %153 : vector<8x64xf32> to vector<8x64xbf16>
    %c0_62 = arith.constant 0 : index
    %c0_63 = arith.constant 0 : index
    %155 = vector.load %arg12[%c0_62, %c0_63] : memref<64x32xbf16, #tpu.memory_space<vmem>>, vector<64x32xbf16>
    %cst_64 = arith.constant dense<0.000000e+00> : vector<8x32xf32>
    %156 = tpu.matmul %154, %155, %cst_64 {dimension_numbers = #tpu.dot_dimension_numbers<[1], [0], [0], [1], [0, 0, 1, 1], [], []>} : vector<8x64xbf16>, vector<64x32xbf16>, vector<8x32xf32> -> vector<8x32xf32>
    %c0_65 = arith.constant 0 : index
    %c0_66 = arith.constant 0 : index
    %157 = vector.load %arg13[%c0_65, %c0_66] : memref<1x32xf32, #tpu.memory_space<vmem>>, vector<1x32xf32>
    %158 = vector.broadcast %157 : vector<1x32xf32> to vector<8x32xf32>
    %159 = arith.addf %156, %158 : vector<8x32xf32>
    %160 = arith.addf %112, %159 : vector<8x32xf32>
    %c0_67 = arith.constant 0 : index
    %c0_68 = arith.constant 0 : index
    %c0_69 = arith.constant 0 : index
    %161 = vector.load %arg14[%c0_67, %c0_68, %c0_69] : memref<1x8x32xf32, #tpu.memory_space<vmem>>, vector<1x8x32xf32>
    %162 = vector.shape_cast %161 : vector<1x8x32xf32> to vector<8x32xf32>
    %163 = vector.shape_cast %160 : vector<8x32xf32> to vector<1x8x32xf32>
    tpu.vector_store %arg14[%c0_67, %c0_68, %c0_69], %163 {strides = array<i32>} : memref<1x8x32xf32, #tpu.memory_space<vmem>>, vector<1x8x32xf32>,
    return
  }
  func.func @transform_0(%arg0: i32) -> (i32, i32, i32) {
    %c0_i32 = arith.constant 0 : i32
    %c0_i32_0 = arith.constant 0 : i32
    %c0_i32_1 = arith.constant 0 : i32
    return %arg0, %c0_i32, %c0_i32_0 : i32, i32, i32
  }
  func.func @transform_1(%arg0: i32) -> (i32, i32) {
    %c0_i32 = arith.constant 0 : i32
    %c0_i32_0 = arith.constant 0 : i32
    %c0_i32_1 = arith.constant 0 : i32
    return %c0_i32, %c0_i32_0 : i32, i32
  }
  func.func @transform_2(%arg0: i32) -> (i32, i32) {
    %c0_i32 = arith.constant 0 : i32
    %c0_i32_0 = arith.constant 0 : i32
    %c0_i32_1 = arith.constant 0 : i32
    return %c0_i32, %c0_i32_0 : i32, i32
  }
  func.func @transform_3(%arg0: i32) -> (i32, i32) {
    %c0_i32 = arith.constant 0 : i32
    %c0_i32_0 = arith.constant 0 : i32
    %c0_i32_1 = arith.constant 0 : i32
    return %c0_i32, %c0_i32_0 : i32, i32
  }
  func.func @transform_4(%arg0: i32) -> (i32, i32) {
    %c0_i32 = arith.constant 0 : i32
    %c0_i32_0 = arith.constant 0 : i32
    %c0_i32_1 = arith.constant 0 : i32
    return %c0_i32, %c0_i32_0 : i32, i32
  }
  func.func @transform_5(%arg0: i32) -> (i32, i32) {
    %c0_i32 = arith.constant 0 : i32
    %c0_i32_0 = arith.constant 0 : i32
    %c0_i32_1 = arith.constant 0 : i32
    return %c0_i32, %c0_i32_0 : i32, i32
  }
  func.func @transform_6(%arg0: i32) -> (i32, i32) {
    %c0_i32 = arith.constant 0 : i32
    %c0_i32_0 = arith.constant 0 : i32
    %c0_i32_1 = arith.constant 0 : i32
    return %c0_i32, %c0_i32_0 : i32, i32
  }
  func.func @transform_7(%arg0: i32) -> (i32, i32) {
    %c0_i32 = arith.constant 0 : i32
    %c0_i32_0 = arith.constant 0 : i32
    %c0_i32_1 = arith.constant 0 : i32
    return %c0_i32, %c0_i32_0 : i32, i32
  }
  func.func @transform_8(%arg0: i32) -> (i32, i32) {
    %c0_i32 = arith.constant 0 : i32
    %c0_i32_0 = arith.constant 0 : i32
    %c0_i32_1 = arith.constant 0 : i32
    return %c0_i32, %c0_i32_0 : i32, i32
  }
  func.func @transform_9(%arg0: i32) -> (i32, i32) {
    %c0_i32 = arith.constant 0 : i32
    %c0_i32_0 = arith.constant 0 : i32
    %c0_i32_1 = arith.constant 0 : i32
    return %c0_i32, %c0_i32_0 : i32, i32
  }
  func.func @transform_10(%arg0: i32) -> (i32, i32) {
    %c0_i32 = arith.constant 0 : i32
    %c0_i32_0 = arith.constant 0 : i32
    %c0_i32_1 = arith.constant 0 : i32
    return %c0_i32, %c0_i32_0 : i32, i32
  }
  func.func @transform_11(%arg0: i32) -> (i32, i32) {
    %c0_i32 = arith.constant 0 : i32
    %c0_i32_0 = arith.constant 0 : i32
    %c0_i32_1 = arith.constant 0 : i32
    return %c0_i32, %c0_i32_0 : i32, i32
  }
  func.func @transform_12(%arg0: i32) -> (i32, i32) {
    %c0_i32 = arith.constant 0 : i32
    %c0_i32_0 = arith.constant 0 : i32
    %c0_i32_1 = arith.constant 0 : i32
    return %c0_i32, %c0_i32_0 : i32, i32
  }
  func.func @transform_13(%arg0: i32) -> (i32, i32, i32) {
    %c0_i32 = arith.constant 0 : i32
    %c0_i32_0 = arith.constant 0 : i32
    %c0_i32_1 = arith.constant 0 : i32
    return %arg0, %c0_i32, %c0_i32_0 : i32, i32, i32
  }
}

</mosaic_0001>

<bundles_post_ra>
// kernel: tpu_custom_call.1
= control target key start
LH: loop header
LB: loop body
LE: loop exit
PB: predicated region body
PF: predicated region fallthrough
CT: control target
= control target key end

     0   :  { %s2367_s0 = inlined_call_operand.vmem [shape: f32[2,8,32], index: 0, kind: input, shape index: {}]   ;;  %s2368_s1 = inlined_call_operand.vmem [shape: f32[1,32], index: 1, kind: input, shape index: {}]   ;;  %s2369_s2 = inlined_call_operand.vmem [shape: f32[1,32], index: 2, kind: input, shape index: {}]   ;;  %s2370_s3 = inlined_call_operand.vmem [shape: bf16[32,96], index: 3, kind: input, shape index: {}]   ;;  %s2371_s4 = inlined_call_operand.hbm [shape: f32[1,96], index: 4, kind: input, shape index: {}]   ;;  %s2372_s5 = inlined_call_operand.vmem [shape: bf16[32,32], index: 5, kind: input, shape index: {}]   ;;  %s2373_s6 = inlined_call_operand.hbm [shape: f32[1,32], index: 6, kind: input, shape index: {}]   ;;  %s2374_s7 = inlined_call_operand.hbm [shape: f32[1,32], index: 7, kind: input, shape index: {}]   ;;  %s2375_s8 = inlined_call_operand.hbm [shape: f32[1,32], index: 8, kind: input, shape index: {}]   ;;  %s2376_s9 = inlined_call_operand.vmem [shape: bf16[32,64], index: 9, kind: input, shape index: {}]   ;;  %s2377_s10 = inlined_call_operand.vmem [shape: f32[1,64], index: 10, kind: input, shape index: {}]   ;;  %s2378_s11 = inlined_call_operand.vmem [shape: bf16[64,32], index: 11, kind: input, shape index: {}]   ;;  %s2379_s12 = inlined_call_operand.vmem [shape: f32[1,32], index: 12, kind: input, shape index: {}]   ;;  %s2380_s13 = inlined_call_operand.hbm [shape: f32[2,8,32], index: 13, kind: output, shape index: {}]  }
   0x1   :  { %2391 = sst [smem:[#allocation22_spill]] %s2380_s13 }
   0x2   :  { %18 = vsyncpa [#allocation4], 0 }
   0x3   :  { %19 = vsyncpa [#allocation7], 0 }
   0x4   :  { %20 = vsyncpa [#allocation10], 0 }
   0x5   :  { %21 = vsyncpa [#allocation5], 0 }
   0x6   :  { %23 = vsyncpa [#allocation5 + $0x1], 0  ;;  %s2010_s25 = smov 0   ;;  %s2012_s26 = smov 0  }
   0x7   :  { %s2014_s27 = smov 0   ;;  %s2016_s28 = smov 0  }
   0x8 LB: > { %2392 = sst [smem:[#allocation16_spill]] %s1905_s25  ;;  %s2031_s29 = sadd.s32 4294967295, %s1917_s28   ;;  %s1917_s28 = sphi %s2016_s28, %s2416_s28   ;;  %s1913_s27 = sphi %s2014_s27, %s2418_s27   ;;  %s1909_s26 = sphi %s2012_s26, %s2420_s26   ;;  %s1905_s25 = sphi %s2010_s25, %s2419_s25  }
   0x9   : > { %2393 = sst [smem:[#allocation17_spill]] %s1913_s27  ;;  %s1435_s30 = sadd.s32 4294967294, %s1917_s28  }
   0xa   : > { %2394 = sst [smem:[#allocation18_spill]] %s1917_s28  ;;  %s2035_s14 = sadd.s32 1, %s1917_s28  }
   0xb   : > { %2395 = sst [smem:[#allocation19_spill]] %s2035_s14  ;;  %s314_s15 = sadd.s32 1, %s1913_s27 }
   0xc   : > { %s311_s16 = ssub.s32 %s1917_s28, %s2035_s14  ;;  %p324_p0 = scmp.ne.s32.totalorder %s1913_s27, %s1909_s26 }
   0xd   : > { %p312_p1 = scmp.eq.s32.totalorder %s311_s16, 0  ;;  %p325_p2 = scmp.eq.s32.totalorder %s2031_s29, 1 }
   0xe   : > { %p330_p3 = scmp.ne.s32.totalorder %s1909_s26, %s1905_s25  ;;  %p331_p4 = scmp.eq.s32.totalorder %s1435_s30, 1 }
   0xf   : > { %s2046_s17 = scalar_select %p312_p1, %s1913_s27, %s314_s15  }
  0x10   : > { %p2048_p5 = por %p325_p2, %p324_p0  ;;  %p2052_p6 = por %p331_p4, %p330_p3 }
  0x11   : > { %2396 = sst [smem:[#allocation20_spill]] %s2046_s17  ;;  %p1436_p7 = scmp.ge.s32.totalorder %s1917_s28, 1 }
  0x12   : > { %s2397_s18 = scalar_select %p2048_p5, 1, 0 }
  0x13   : > { %s2398_s19 = scalar_select %p2052_p6, 1, 0 }
  0x14   : > { %p338_p8 = scmp.lt.s32.totalorder %s1917_s28, 3  ;;  %p2386_p9 = scmp.eq.s32.totalorder %s2031_s29, 0 }
  0x15   : > { %2399 = sst [smem:[#allocation21_spill]] %s2398_s19  ;;  %s1919_s21 = smov [#allocation6]  }
  0x16   : > { %p2059_p10 = pnand %p1436_p7, %p338_p8  ;;  %s374_s22 = sshll.u32 %s1919_s21, 4  ;;  %s375_s22 = int_to_ptr.vmem [resolvable:$true] %s374_s22 }
  0x17   : > { %s1920_s23 = smov [#allocation3]   ;;  %s1921_s15 = smov [#allocation8]  }
  0x18   : > { %s2400_s20 = scalar_select %p2059_p10, 1, 0 }
  0x19   : > { %p1621_p11 = pneg %p2059_p10  ;;  %s360_s24 = sshll.u32 %s1920_s23, 4  ;;  %s2071_s24 = int_to_ptr.vmem [resolvable:$true] %s360_s24 }
  0x1a   : > { %s385_s16 = sshll.u32 %s1921_s15, 4  ;;  %s1731_s21 = scalar_lea.hbm %s2373_s6, 16  ;;  %s2073_s16 = int_to_ptr.vmem [resolvable:$true] %s385_s16 }
  0x1b   : > { %p2067_p12 = pnand %p2386_p9, %p1621_p11  ;;  %p1732_p13 = scmp.ne.s32.totalorder %s2373_s6, %s1731_s21 }
  0x1c   : > { %p1738_p3 = scmp.lt.u32.totalorder %s1731_s21, %s2373_s6 }
  0x1d   : > { %p2083_p0 = pneg %p2067_p12 }
  0x1f   : > { %p1734_p1 = pnand %p2083_p0, %p1732_p13 }
  0x21   : > { %p1735_p2 = pneg %p1734_p1 }
  0x23   : > { %p1740_p4 = pnand %p1738_p3, %p1735_p2 }
  0x25   : > { %1743 = shalt.err (!%p1740_p4)
}
  0x26   : > { %s1744_s27 = scalar_lea.vmem %s375_s22, 16  ;;  %s1751_s14 = scalar_lea.vmem %s375_s22, 32 }
  0x27   : > { %p1745_p7 = scmp.ne.s32.totalorder %s375_s22, %s1744_s27  ;;  %p1752_p9 = scmp.lt.s32.totalorder %s375_s22, %s375_s22 }
  0x28   : > { %p1753_p6 = scmp.lt.s32.totalorder %s1751_s14, %s1744_s27 }
  0x29   : > { %p1747_p8 = pnand %p1745_p7, %p2083_p0 }
  0x2a   : > { %p1754_p5 = por %p1753_p6, %p1752_p9 }
  0x2b   : > { %p1748_p11 = pneg %p1747_p8 }
  0x2d   : > { %p1755_p10 = pnand %p1754_p5, %p1748_p11 }
  0x2f   : > { %1758 = shalt.err (!%p1755_p10)
}
  0x30   : > { %1627 = dma.hbm_to_vmem [thread:$0]  (!%p2067_p12), %s2373_s6, 16, %s375_s22, [#allocation7]  }
  0x31   : > { %s1759_s15 = scalar_lea.hbm %s2371_s4, 16 }
  0x32   : > { %p1760_p13 = scmp.ne.s32.totalorder %s2371_s4, %s1759_s15  ;;  %p1766_p5 = scmp.lt.u32.totalorder %s1759_s15, %s2371_s4 }
  0x34   : > { %p1762_p1 = pnand %p1760_p13, %p2083_p0 }
  0x36   : > { %p1763_p6 = pneg %p1762_p1 }
  0x38   : > { %p1768_p9 = pnand %p1766_p5, %p1763_p6 }
  0x3a   : > { %1771 = shalt.err (!%p1768_p9)
}
  0x3b   : > { %s1772_s22 = scalar_lea.vmem %s2071_s24, 16  ;;  %s1779_s13 = scalar_lea.vmem %s2071_s24, 32 }
  0x3c   : > { %p1773_p10 = scmp.ne.s32.totalorder %s2071_s24, %s1772_s22  ;;  %p1780_p4 = scmp.lt.s32.totalorder %s2071_s24, %s2071_s24 }
  0x3d   : > { %p1781_p7 = scmp.lt.s32.totalorder %s1779_s13, %s1772_s22 }
  0x3e   : > { %p1775_p2 = pnand %p1773_p10, %p2083_p0 }
  0x3f   : > { %p1782_p8 = por %p1781_p7, %p1780_p4 }
  0x40   : > { %p1776_p3 = pneg %p1775_p2 }
  0x42   : > { %p1783_p11 = pnand %p1782_p8, %p1776_p3 }
  0x44   : > { %1786 = shalt.err (!%p1783_p11)
}
  0x45   : > { %1624 = dma.hbm_to_vmem [thread:$0]  (!%p2067_p12), %s2371_s4, 16, %s2071_s24, [#allocation4]  }
  0x46   : > { %s1787_s21 = scalar_lea.hbm %s2374_s7, 16 }
  0x47   : > { %p1788_p13 = scmp.ne.s32.totalorder %s2374_s7, %s1787_s21  ;;  %p1794_p5 = scmp.lt.u32.totalorder %s1787_s21, %s2374_s7 }
  0x49   : > { %p1790_p1 = pnand %p1788_p13, %p2083_p0 }
  0x4b   : > { %p1791_p6 = pneg %p1790_p1 }
  0x4d   : > { %p1796_p9 = pnand %p1794_p5, %p1791_p6 }
  0x4f   : > { %1799 = shalt.err (!%p1796_p9)
}
  0x50   : > { %s1800_s24 = scalar_lea.vmem %s2073_s16, 16  ;;  %s1807_s13 = scalar_lea.vmem %s2073_s16, 32 }
  0x51   : > { %p1801_p10 = scmp.ne.s32.totalorder %s2073_s16, %s1800_s24  ;;  %p1808_p4 = scmp.lt.s32.totalorder %s2073_s16, %s2073_s16 }
  0x52   : > { %p1809_p7 = scmp.lt.s32.totalorder %s1807_s13, %s1800_s24 }
  0x53   : > { %p1803_p2 = pnand %p1801_p10, %p2083_p0 }
  0x54   : > { %p1810_p8 = por %p1809_p7, %p1808_p4 }
  0x55   : > { %p1804_p3 = pneg %p1803_p2 }
  0x57   : > { %p1811_p11 = pnand %p1810_p8, %p1804_p3 }
  0x59   : > { %1814 = shalt.err (!%p1811_p11)
}
  0x5a   : > { %1630 = dma.hbm_to_vmem [thread:$0]  (!%p2067_p12), %s2374_s7, 16, %s2073_s16, [#allocation7]  }
  0x5b   : > { %s1922_s19 = smov [#allocation9]   ;;  %s1815_s27 = scalar_lea.hbm %s2375_s8, 16 }
  0x5c   : > { %s396_s25 = sshll.u32 %s1922_s19, 4  ;;  %p1816_p13 = scmp.ne.s32.totalorder %s2375_s8, %s1815_s27  ;;  %s397_s25 = int_to_ptr.vmem [resolvable:$true] %s396_s25 }
  0x5d   : > { %p1822_p5 = scmp.lt.u32.totalorder %s1815_s27, %s2375_s8 }
  0x5e   : > { %p1818_p1 = pnand %p1816_p13, %p2083_p0 }
  0x60   : > { %p1819_p6 = pneg %p1818_p1 }
  0x62   : > { %p1824_p9 = pnand %p1822_p5, %p1819_p6 }
  0x64   : > { %1827 = shalt.err (!%p1824_p9)
}
  0x65   : > { %s1828_s16 = scalar_lea.vmem %s397_s25, 16  ;;  %s1835_s28 = scalar_lea.vmem %s397_s25, 32 }
  0x66   : > { %p1829_p10 = scmp.ne.s32.totalorder %s397_s25, %s1828_s16  ;;  %p1836_p4 = scmp.lt.s32.totalorder %s397_s25, %s397_s25 }
  0x67   : > { %p1837_p7 = scmp.lt.s32.totalorder %s1835_s28, %s1828_s16 }
  0x68   : > { %p1831_p2 = pnand %p1829_p10, %p2083_p0 }
  0x69   : > { %p1838_p8 = por %p1837_p7, %p1836_p4 }
  0x6a   : > { %p1832_p3 = pneg %p1831_p2 }
  0x6c   : > { %p1839_p11 = pnand %p1838_p8, %p1832_p3 }
  0x6e   : > { %1842 = shalt.err (!%p1839_p11)
}
  0x6f   : > { %1633 = dma.hbm_to_vmem [thread:$0]  (!%p2067_p12), %s2375_s8, 16, %s397_s25, [#allocation10]  }
  0x70   : > { %p2403_p13 = scmp.ne.s32.totalorder %s2400_s20, 0 }
  0x71   : > { %p2404_p1 = scmp.eq.s32.totalorder (!%p2403_p13), %s2031_s29, 0 }
  0x72   : > { %428 = sbr.rel (%p2403_p13) target bundleno = 2564 (0xa04), region = 72 }
  0x79   : > { %1888 = dma.done.wait (%p2404_p1), [#allocation4], 16   ;;  %p2405_p0 = pmov %p2404_p1 }
  0x7b   : > { %1890 = vsyncadd (%p2405_p0), [#allocation4], 4294967280  ;;  %p2406_p6 = pmov %p2405_p0 }
  0x7c   : > { %p2407_p5 = pmov %p2405_p0 }
  0x7d   : > { %1892 = dma.done.wait (%p2406_p6), [#allocation7], 32  }
  0x7e   : > { %1894 = vsyncadd (%p2407_p5), [#allocation7], 4294967264  ;;  %p2408_p9 = pmov %p2405_p0 }
  0x7f   : > { %p2409_p12 = pmov %p2405_p0 }
  0x80   : > { %1896 = dma.done.wait (%p2408_p9), [#allocation10], 16  }
  0x81   : > { %1898 = vsyncadd (%p2409_p12), [#allocation10], 4294967280  ;;  %p483_p10 = scmp.lt.s32.totalorder %s2031_s29, 1  ;;  %vm491_vm0 = vcmask 261120   ;;  %v1699_v7 = vld [vmem:[%s2370_s3] sm:$0xff]   ;;  %v1923_v8 = vmov 0.0  }
  0x82   : > { %1519 = vmatprep.subr.bf16.mxu0 %v1923_v8  ;;  %vm1924_vm1 = vmmov 0   ;;  %v1700_v9 = vld [vmem:[%s2370_s3 + $0x8] sm:$0xff]   ;;  %1527 = vmatprep.subr.bf16.mxu1 %v1923_v8  ;;  %v1449_v14 = vld [vmem:[%s2368_s1] ss:$0 sm:$0xff]  ;;  %v1451_v20 = vld [vmem:[#allocation3] ss:$0 sm:$0xff] }
  0x83   : > { %s484_s20 = scalar_select %p483_p10, %s2031_s29, 1  ;;  %1523 = vmatprep.mubr.msk.bf16.mxu0 %vm1924_vm1, %v1923_v8  ;;  %1520 = vmatpush3.bf16.msra.mxu0 %v1699_v7  ;;  %v1450_v16 = vld [vmem:[%s2369_s2] ss:$0 sm:$0xff]  ;;  %vm593_vm2 = vcmask 64512   ;;  %vm655_vm3 = vcmask 1043456   ;;  %vm702_vm4 = vcmask 60416  }
  0x84   : > { %1521 = vmatprep.subr.bf16.mxu0 %v1923_v8  ;;  %1529 = vmatprep.mubr.msk.bf16.mxu1 %vm1924_vm1, %v1923_v8  ;;  %s1925_s17 = smov 96   ;;  %s1926_s19 = smov 120   ;;  %vm822_vm5 = vcmask 126016   ;;  %vm941_vm6 = vcmask 191616   ;;  %vm1060_vm7 = vcmask 257216   ;;  %vm1275_vm8 = vcmask 523264  }
  0x85   : > { %s1448_s30 = sshll.u32 %s484_s20, 3  ;;  %s1927_s20 = smov 88  }
  0x86   : > { %s486_s21 = scalar_lea.vmem %s2367_s0, %s1448_s30  ;;  %s1928_s30 = smov 80  }
  0x87   : > { %v2184_v0 = vld [vmem:[%s486_s21] sm:$0xff]  ;;  %1522 = vmatpush3.bf16.msra.mxu0 %v1700_v9  ;;  %s1929_s23 = smov 112   ;;  %s1930_s25 = smov 72  }
  0x88   : > { %v492_v1 = vsel %vm491_vm0, %v2184_v0, 0.0  ;;  %1533 = vmatprep.subr.bf16.mxu0 %v1923_v8  ;;  %s1931_s21 = smov 104   ;;  %s1932_s15 = smov 64  }
  0x89   : > { %493 = vadd.xlane.f32.xlu0 %v492_v1  ;;  %s1933_s27 = smov 56   ;;  %s1934_s14 = smov 48  }
  0x8a   : > { %s1935_s22 = smov 40   ;;  %s1936_s24 = smov 8  }
  0x8b   : > { %p2411_p3 = scmp.ne.s32.totalorder %s2397_s18, 0  ;;  %s1939_s28 = smov [#allocation11]  }
 0x116   : > { %v494_v2 = vpop.xlane.xlu0 %493 }
 0x117   : > { %v496_v3 = vmul.f32 0.03125, %v494_v2 }
 0x119   : > { %v497_v4 = vsub.f32 %v2184_v0, %v496_v3 }
 0x11b   : > { %v498_v5 = vmul.f32 %v497_v4, %v497_v4 }
 0x11d   : > { %v499_v6 = vsel %vm491_vm0, %v498_v5, 0.0 }
 0x11e   : > { %500 = vadd.xlane.f32.xlu0 %v499_v6 }
 0x1ab   : > { %v501_v10 = vpop.xlane.xlu0 %500 }
 0x1ac   : > { %v502_v11 = vmul.f32 0.03125, %v501_v10 }
 0x1ae   : > { %v503_v12 = vadd.f32 1e-05, %v502_v11 }
 0x1b0   : > { %1709 = vrsqrt.f32 %v503_v12 }
 0x1ba   : > { %v1710_v13 = vpop.eup %1709 }
 0x1bb   : > { %v505_v15 = vmul.f32 %v1710_v13, %v497_v4 }
 0x1bd   : > { %v512_v17 = vmul.f32 %v1449_v14, %v505_v15 }
 0x1bf   : > { %v519_v18 = vadd.f32 %v1450_v16, %v512_v17 }
 0x1c1   : > { %v520_v19 = vpack.c.bf16 %v519_v18, %v519_v18 }
 0x1c3   : > { %1524 = vmatmul.mubr.msk.bf16.vlgmr.msra.gmra.mrb[0].mxu0 %vm491_vm0, %v520_v19 }
 0x1c4   : > { %1535 = vmatprep.mubr.msk.bf16.mxu0 %vm1924_vm1, %v1923_v8 }
 0x296   : > { %v581_v21 = vpop.f32.mrb[0].mxu0 }
 0x297   : > { %v582_v22 = vadd.f32 %v1451_v20, %v581_v21  ;;  %v1525_v23 = vpop.f32.mrb[1].mxu0 }
 0x298   : > { %v584_v24 = vpop.f32.mrb[2].mxu0 }
 0x299   : > { %v587_v25 = vmul.f32 0.35355338, %v582_v22  ;;  %v2213_v26 = vpack.c.bf16 %v582_v22, %v582_v22  ;;  %v1526_v27 = vpop.f32.mrb[3].mxu0 }
 0x29b   : > { %v588_v28 = vpack.c.bf16 %v587_v25, %v587_v25  ;;  %591 = vrot.lane.b32.xlu1 %v2213_v26, %s1925_s17  ;;  %s1847_s17 = sshll.u32 %s1939_s28, 4  ;;  %s1848_s17 = int_to_ptr.vmem [resolvable:$false] %s1847_s17 }
 0x29d   : > { %705 = vrot.lane.b32.xlu0 %v588_v28, %s1926_s19  ;;  %s1937_s19 = smov 16  }
 0x29f   : > { %707 = vrot.lane.b32.xlu1 %v2213_v26, %s1927_s20  ;;  %s1938_s20 = smov 24  }
 0x2a3   : > { %826 = vrot.lane.b32.xlu1 %v2213_v26, %s1928_s30 }
 0x2a7   : > { %824 = vrot.lane.b32.xlu1 %v588_v28, %s1929_s23 }
 0x2ab   : > { %945 = vrot.lane.b32.xlu1 %v2213_v26, %s1930_s25 }
 0x2af   : > { %943 = vrot.lane.b32.xlu1 %v588_v28, %s1931_s21  ;;  %s1483_s21 = sshll.u32 %s2031_s29, 7 }
 0x30d   : > { %v592_v29 = vpop.permute.xlu1 %591 }
 0x30e   : > { %v598_v30 = vsel %vm593_vm2, %v592_v29, 0 }
 0x30f   : > { %1528 = vmatpush3.bf16.xpose.msra.mxu1 %v598_v30  ;;  %v706_v34 = vpop.permute.xlu0 %705 }
 0x310   : > { %1539 = vmatprep.subr.bf16.mxu1 %v1923_v8 }
 0x311   : > { %v708_v31 = vpop.permute.xlu1 %707 }
 0x312   : > { %v713_v32 = vsel %vm593_vm2, %v708_v31, 0 }
 0x315   : > { %v827_v33 = vpop.permute.xlu1 %826 }
 0x316   : > { %1530 = vmatmul.mubr.msk.bf16.vlgmr.msra.gmra.mrb[0].mxu1 %vm593_vm2, %v588_v28  ;;  %v832_v36 = vsel %vm593_vm2, %v827_v33, 0 }
 0x317   : > { %1540 = vmatpush3.bf16.xpose.msra.mxu1 %v713_v32  ;;  %1541 = vmatprep.mubr.msk.bf16.mxu1 %vm1924_vm1, %v1923_v8 }
 0x318   : > { %1551 = vmatprep.subr.bf16.mxu1 %v1923_v8 }
 0x319   : > { %v825_v35 = vpop.permute.xlu1 %824 }
 0x31d   : > { %v946_v37 = vpop.permute.xlu1 %945 }
 0x31e   : > { %1542 = vmatmul.mubr.msk.bf16.vlgmr.msra.gmra.mrb[4].mxu1 %vm593_vm2, %v706_v34  ;;  %v951_v38 = vsel %vm593_vm2, %v946_v37, 0 }
 0x31f   : > { %1552 = vmatpush3.bf16.xpose.msra.mxu1 %v832_v36  ;;  %1553 = vmatprep.mubr.msk.bf16.mxu1 %vm1924_vm1, %v1923_v8 }
 0x320   : > { %1563 = vmatprep.subr.bf16.mxu1 %v1923_v8 }
 0x321   : > { %v944_v39 = vpop.permute.xlu1 %943 }
 0x326   : > { %1554 = vmatmul.mubr.msk.bf16.vlgmr.msra.gmra.mrb[8].mxu1 %vm593_vm2, %v825_v35 }
 0x327   : > { %1564 = vmatpush3.bf16.xpose.msra.mxu1 %v951_v38  ;;  %1565 = vmatprep.mubr.msk.bf16.mxu1 %vm1924_vm1, %v1923_v8 }
 0x328   : > { %1575 = vmatprep.subr.bf16.mxu1 %v1923_v8 }
 0x32e   : > { %1566 = vmatmul.mubr.msk.bf16.vlgmr.msra.gmra.mrb[12].mxu1 %vm593_vm2, %v944_v39 }
 0x32f   : > { %1579 = vmatprep.mubr.msk.bf16.mxu1 %vm1924_vm1, %v1923_v8 }
 0x3e9   : > { %v634_v40 = vpop.f32.mrb[0].mxu1 }
 0x3ea   : > { %v1531_v41 = vpop.f32.mrb[1].mxu1  ;;  %v640_v42 = vsel %vm593_vm2, %v634_v40, -inf }
 0x3eb   : > { %641 = vmax.xlane.f32.xlu1 %v640_v42  ;;  %v637_v43 = vpop.f32.mrb[2].mxu1 }
 0x3ec   : > { %v1532_v44 = vpop.f32.mrb[3].mxu1 }
 0x3f1   : > { %v749_v45 = vpop.f32.mrb[4].mxu1 }
 0x3f2   : > { %v1543_v46 = vpop.f32.mrb[5].mxu1  ;;  %v755_v47 = vsel %vm593_vm2, %v749_v45, -inf }
 0x3f3   : > { %756 = vmax.xlane.f32.xlu0 %v755_v47  ;;  %v752_v48 = vpop.f32.mrb[6].mxu1 }
 0x3f4   : > { %v1544_v49 = vpop.f32.mrb[7].mxu1 }
 0x3f9   : > { %v868_v50 = vpop.f32.mrb[8].mxu1 }
 0x3fa   : > { %v1555_v51 = vpop.f32.mrb[9].mxu1  ;;  %v874_v59 = vsel %vm593_vm2, %v868_v50, -inf }
 0x3fb   : > { %v871_v52 = vpop.f32.mrb[10].mxu1 }
 0x3fc   : > { %650 = vrot.lane.b32.xlu1 %v2213_v26, %s1932_s15  ;;  %v1556_v53 = vpop.f32.mrb[11].mxu1 }
 0x401   : > { %v987_v54 = vpop.f32.mrb[12].mxu1 }
 0x402   : > { %v1567_v55 = vpop.f32.mrb[13].mxu1  ;;  %v993_v56 = vsel %vm593_vm2, %v987_v54, -inf }
 0x403   : > { %994 = vmax.xlane.f32.xlu0 %v993_v56  ;;  %v990_v57 = vpop.f32.mrb[14].mxu1 }
 0x404   : > { %v1568_v58 = vpop.f32.mrb[15].mxu1 }
 0x419   : > { %765 = vrot.lane.b32.xlu0 %v2213_v26, %s1933_s27 }
 0x420   : > { %875 = vmax.xlane.f32.xlu1 %v874_v59 }
 0x431   : > { %884 = vrot.lane.b32.xlu1 %v2213_v26, %s1934_s14 }
 0x435   : > { %1003 = vrot.lane.b32.xlu1 %v2213_v26, %s1935_s22 }
 0x478   : > { %v642_v60 = vpop.xlane.xlu1 %641 }
 0x479   : > { %v643_v61 = vsub.f32 %v634_v40, %v642_v60 }
 0x47b   : > { %v644_v62 = vmul.f32 1.442695, %v643_v61 }
 0x47c   : > { %v651_v63 = vpop.permute.xlu1 %650 }
 0x47d   : > { %1711 = vpow2.f32 %v644_v62  ;;  %v657_v1 = vsel %vm655_vm3, %v651_v63, 0 }
 0x47e   : > { %1534 = vmatpush3.bf16.msra.mxu0 %v657_v1 }
 0x47f   : > { %1545 = vmatprep.subr.bf16.mxu0 %v1923_v8 }
 0x480   : > { %v757_v2 = vpop.xlane.xlu0 %756 }
 0x481   : > { %v758_v3 = vsub.f32 %v749_v45, %v757_v2 }
 0x483   : > { %v759_v4 = vmul.f32 1.442695, %v758_v3 }
 0x485   : > { %1713 = vpow2.f32 %v759_v4 }
 0x487   : > { %v1712_v5 = vpop.eup %1711 }
 0x488   : > { %v649_v6 = vpack.c.bf16 %v1712_v5, %v1712_v5  ;;  %v646_v18 = vsel %vm593_vm2, %v1712_v5, 0.0  ;;  %v1466_v5 = vld [vmem:[#allocation6] ss:$0 sm:$0xff] }
 0x48a   : > { %1536 = vmatmul.mubr.msk.bf16.vlgmr.msra.gmra.mrb[4].mxu0 %vm593_vm2, %v649_v6 }
 0x48b   : > { %1547 = vmatprep.mubr.msk.bf16.mxu0 %vm1924_vm1, %v1923_v8 }
 0x48f   : > { %v1714_v7 = vpop.eup %1713 }
 0x490   : > { %v995_v9 = vpop.xlane.xlu0 %994  ;;  %v761_v10 = vsel %vm593_vm2, %v1714_v7, 0.0  ;;  %v764_v15 = vpack.c.bf16 %v1714_v7, %v1714_v7 }
 0x491   : > { %v996_v11 = vsub.f32 %v987_v54, %v995_v9  ;;  %762 = vadd.xlane.f32.xlu0 %v761_v10  ;;  %v1702_v54 = vld [vmem:[%s2372_s5 + $0x8] sm:$0xff]  }
 0x493   : > { %v997_v12 = vmul.f32 1.442695, %v996_v11 }
 0x494   : > { %v766_v13 = vpop.permute.xlu0 %765 }
 0x495   : > { %1715 = vpow2.f32 %v997_v12  ;;  %v771_v14 = vsel %vm655_vm3, %v766_v13, 0 }
 0x496   : > { %1546 = vmatpush3.bf16.msra.mxu0 %v771_v14 }
 0x497   : > { %1557 = vmatprep.subr.bf16.mxu0 %v1923_v8 }
 0x499   : > { %1548 = vmatmul.mubr.msk.bf16.vlgmr.msra.gmra.mrb[8].mxu0 %vm593_vm2, %v764_v15 }
 0x49a   : > { %1559 = vmatprep.mubr.msk.bf16.mxu0 %vm1924_vm1, %v1923_v8 }
 0x49f   : > { %v1716_v16 = vpop.eup %1715 }
 0x4a0   : > { %v999_v17 = vsel %vm593_vm2, %v1716_v16, 0.0  ;;  %v1002_v29 = vpack.c.bf16 %v1716_v16, %v1716_v16 }
 0x4a1   : > { %1000 = vadd.xlane.f32.xlu0 %v999_v17 }
 0x4a5   : > { %647 = vadd.xlane.f32.xlu0 %v646_v18 }
 0x4ad   : > { %v876_v19 = vpop.xlane.xlu1 %875 }
 0x4ae   : > { %v877_v20 = vsub.f32 %v868_v50, %v876_v19  ;;  %v1701_v50 = vld [vmem:[%s2372_s5] sm:$0xff]  }
 0x4af   : > { %1576 = vmatpush3.bf16.msra.mxu1 %v1701_v50  ;;  %v1703_v19 = vld [vmem:[%s2376_s9] sm:$0xff]  }
 0x4b0   : > { %v878_v21 = vmul.f32 1.442695, %v877_v20  ;;  %1577 = vmatprep.subr.bf16.mxu1 %v1923_v8 }
 0x4b1   : > { %v885_v22 = vpop.permute.xlu1 %884 }
 0x4b2   : > { %1717 = vpow2.f32 %v878_v21  ;;  %v890_v23 = vsel %vm655_vm3, %v885_v22, 0 }
 0x4b3   : > { %1558 = vmatpush3.bf16.msra.mxu0 %v890_v23  ;;  %1578 = vmatpush3.bf16.msra.mxu1 %v1702_v54 }
 0x4b4   : > { %1569 = vmatprep.subr.bf16.mxu0 %v1923_v8  ;;  %1591 = vmatprep.subr.bf16.mxu1 %v1923_v8 }
 0x4b5   : > { %v1004_v25 = vpop.permute.xlu1 %1003 }
 0x4b6   : > { %v1009_v28 = vsel %vm655_vm3, %v1004_v25, 0 }
 0x4bc   : > { %v1718_v24 = vpop.eup %1717 }
 0x4bd   : > { %v880_v26 = vsel %vm593_vm2, %v1718_v24, 0.0  ;;  %v883_v27 = vpack.c.bf16 %v1718_v24, %v1718_v24  ;;  %v1470_v24 = vld [vmem:[#allocation8] ss:$0 sm:$0xff] }
 0x4be   : > { %881 = vadd.xlane.f32.xlu1 %v880_v26  ;;  %v1471_v26 = vld [vmem:[#allocation9] ss:$0 sm:$0xff] }
 0x4bf   : > { %1560 = vmatmul.mubr.msk.bf16.vlgmr.msra.gmra.mrb[12].mxu0 %vm593_vm2, %v883_v27 }
 0x4c0   : > { %1570 = vmatpush3.bf16.msra.mxu0 %v1009_v28  ;;  %1571 = vmatprep.mubr.msk.bf16.mxu0 %vm1924_vm1, %v1923_v8 }
 0x4c1   : > { %1583 = vmatprep.subr.bf16.mxu0 %v1923_v8 }
 0x4c7   : > { %1572 = vmatmul.mubr.msk.bf16.vlgmr.msra.gmra.mrb[16].mxu0 %vm593_vm2, %v1002_v29 }
 0x4c8   : > { %1587 = vmatprep.mubr.msk.bf16.mxu0 %vm1924_vm1, %v1923_v8  ;;  %1584 = vmatpush3.bf16.msra.mxu0 %v1703_v19 }
 0x4c9   : > { %1585 = vmatprep.subr.bf16.mxu0 %v1923_v8 }
 0x51e   : > { %v763_v30 = vpop.xlane.xlu0 %762 }
 0x52e   : > { %v1001_v31 = vpop.xlane.xlu0 %1000 }
 0x532   : > { %v648_v32 = vpop.xlane.xlu0 %647 }
 0x533   : > { %1719 = vrcp.f32 %v648_v32  ;;  %v1707_v32 = vld [vmem:[%s2378_s11 + $0x10] sm:$0xff]  }
 0x534   : > { %1721 = vrcp.f32 %v763_v30  ;;  %v1705_v30 = vld [vmem:[%s2378_s11] sm:$0xff]  }
 0x53d   : > { %v1720_v33 = vpop.eup %1719 }
 0x53e   : > { %v1722_v40 = vpop.eup %1721 }
 0x54b   : > { %v882_v47 = vpop.xlane.xlu1 %881 }
 0x54c   : > { %1723 = vrcp.f32 %v882_v47 }
 0x54d   : > { %1725 = vrcp.f32 %v1001_v31  ;;  %v1706_v31 = vld [vmem:[%s2378_s11 + $0x8] sm:$0xff]  }
 0x556   : > { %v1724_v48 = vpop.eup %1723 }
 0x557   : > { %v1726_v57 = vpop.eup %1725 }
 0x55d   : > { %v693_v34 = vpop.f32.mrb[4].mxu0 }
 0x55e   : > { %v700_v35 = vmul.f32 %v1720_v33, %v693_v34  ;;  %v1537_v36 = vpop.f32.mrb[5].mxu0  ;;  %v1708_v33 = vld [vmem:[%s2378_s11 + $0x18] sm:$0xff]   ;;  %v1472_v34 = vld [vmem:[%s2377_s10] ss:$0 sm:$0xff] }
 0x55f   : > { %v696_v37 = vpop.f32.mrb[6].mxu0 }
 0x560   : > { %v701_v38 = vpack.c.bf16 %v700_v35, %v700_v35  ;;  %v1538_v39 = vpop.f32.mrb[7].mxu0 }
 0x562   : > { %703 = vst.msk [vmem:[#allocation2] sm:$0xf] %vm702_vm4, %v701_v38 }
 0x56c   : > { %v807_v41 = vpop.f32.mrb[8].mxu0 }
 0x56d   : > { %v814_v42 = vmul.f32 %v1722_v40, %v807_v41  ;;  %v1549_v43 = vpop.f32.mrb[9].mxu0 }
 0x56e   : > { %v810_v44 = vpop.f32.mrb[10].mxu0 }
 0x56f   : > { %v1486_v45 = vpack.c.bf16 %v814_v42, %v814_v42  ;;  %v1550_v46 = vpop.f32.mrb[11].mxu0 }
 0x571   : > { %819 = vrot.lane.b32.xlu1 %v1486_v45, %s1936_s24  ;;  %s2410_s24 = sld [smem:[#allocation22_spill]] }
 0x577   : > { %s2324_s13 = scalar_lea.hbm %s2410_s24, %s1483_s21 }
 0x592   : > { %v926_v49 = vpop.f32.mrb[12].mxu0 }
 0x593   : > { %v933_v51 = vmul.f32 %v1724_v48, %v926_v49  ;;  %v1561_v52 = vpop.f32.mrb[13].mxu0  ;;  %v1476_v49 = vld [vmem:[%s2379_s12] ss:$0 sm:$0xff] }
 0x594   : > { %v929_v53 = vpop.f32.mrb[14].mxu0 }
 0x595   : > { %v1487_v55 = vpack.c.bf16 %v933_v51, %v933_v51  ;;  %v1562_v56 = vpop.f32.mrb[15].mxu0 }
 0x597   : > { %938 = vrot.lane.b32.xlu0 %v1487_v55, %s1937_s19  ;;  %s1849_s19 = scalar_lea.vmem %s1848_s17, 256 }
 0x59a   : > { %v1045_v58 = vpop.f32.mrb[16].mxu0 }
 0x59b   : > { %v1052_v59 = vmul.f32 %v1726_v57, %v1045_v58  ;;  %v1573_v60 = vpop.f32.mrb[17].mxu0 }
 0x59c   : > { %v1048_v61 = vpop.f32.mrb[18].mxu0 }
 0x59d   : > { %v1488_v62 = vpack.c.bf16 %v1052_v59, %v1052_v59  ;;  %v1574_v63 = vpop.f32.mrb[19].mxu0 }
 0x59f   : > { %1057 = vrot.lane.b32.xlu1 %v1488_v62, %s1938_s20  ;;  %s480_s20 = sand.u32 1, %s1909_s26  }
 0x5a0   : > { %s1447_s30 = sshll.u32 %s480_s20, 3  ;;  %s1322_s29 = scalar_lea.sflag [#allocation5], %s480_s20 }
 0x5a1   : > { %s482_s15 = scalar_lea.vmem [#allocation11], %s1447_s30 }
 0x5a2   : > { %s1335_s27 = sshll.u32 %s482_s15, 4  ;;  %s2326_s27 = int_to_ptr.vmem [resolvable:$true] %s1335_s27 }
 0x5a3   : > { %s1843_s16 = scalar_lea.vmem %s2326_s27, 128  ;;  %p1850_p8 = scmp.lt.s32.totalorder %s2326_s27, %s1848_s17 }
 0x5a4   : > { %p1844_p2 = scmp.ne.s32.totalorder %s2326_s27, %s1843_s16  ;;  %p1851_p11 = scmp.lt.s32.totalorder %s1849_s19, %s1843_s16 }
 0x5a6   : > { %p1845_p4 = pnand %p1844_p2, %p2411_p3  ;;  %p1852_p13 = por %p1851_p11, %p1850_p8 }
 0x5a8   : > { %p1846_p7 = pneg %p1845_p4 }
 0x5aa   : > { %p1853_p1 = pnand %p1852_p13, %p1846_p7 }
 0x5e3   : > { %v820_v1 = vpop.permute.xlu1 %819 }
 0x5e4   : > { %823 = vst.msk [vmem:[#allocation2] sm:$0xf] %vm822_vm5, %v820_v1 }
 0x609   : > { %v939_v2 = vpop.permute.xlu0 %938 }
 0x60a   : > { %942 = vst.msk [vmem:[#allocation2] sm:$0xf] %vm941_vm6, %v939_v2 }
 0x611   : > { %v1058_v3 = vpop.permute.xlu1 %1057 }
 0x612   : > { %1061 = vst.msk [vmem:[#allocation2] sm:$0xf] %vm1060_vm7, %v1058_v3 }
 0x619   : > { %v1062_v4 = vld [vmem:[#allocation2] sm:$0xf] }
 0x61a   : > { %1580 = vmatmul.mubr.msk.bf16.vlgmr.msra.gmra.mrb[16].mxu1 %vm491_vm0, %v1062_v4 }
 0x61b   : > { %1599 = vmatprep.mubr.msk.bf16.mxu1 %vm1924_vm1, %v1923_v8  ;;  %1592 = vmatpush3.bf16.msra.mxu1 %v1705_v30 }
 0x61c   : > { %1593 = vmatprep.subr.bf16.mxu1 %v1923_v8 }
 0x61f   : > { %1594 = vmatpush3.bf16.msra.mxu1 %v1706_v31 }
 0x620   : > { %1595 = vmatprep.subr.bf16.mxu1 %v1923_v8 }
 0x623   : > { %1596 = vmatpush3.bf16.msra.mxu1 %v1707_v32 }
 0x624   : > { %1597 = vmatprep.subr.bf16.mxu1 %v1923_v8 }
 0x627   : > { %1598 = vmatpush3.bf16.msra.mxu1 %v1708_v33 }
 0x6ed   : > { %v1123_v6 = vpop.f32.mrb[16].mxu1 }
 0x6ee   : > { %v1124_v7 = vadd.f32 %v1466_v5, %v1123_v6  ;;  %v1581_v9 = vpop.f32.mrb[17].mxu1 }
 0x6ef   : > { %v1126_v10 = vpop.f32.mrb[18].mxu1 }
 0x6f0   : > { %v2283_v11 = vadd.f32 %v1124_v7, %v2184_v0  ;;  %v1582_v12 = vpop.f32.mrb[19].mxu1  ;;  %v1704_v0 = vld [vmem:[%s2376_s9 + $0x8] sm:$0xff]  }
 0x6f1   : > { %1586 = vmatpush3.bf16.msra.mxu0 %v1704_v0 }
 0x6f2   : > { %v1132_v13 = vsel %vm491_vm0, %v2283_v11, 0.0 }
 0x6f3   : > { %1133 = vadd.xlane.f32.xlu1 %v1132_v13 }
 0x780   : > { %v1134_v14 = vpop.xlane.xlu1 %1133 }
 0x781   : > { %v1135_v15 = vmul.f32 0.03125, %v1134_v14 }
 0x783   : > { %v1136_v16 = vsub.f32 %v2283_v11, %v1135_v15 }
 0x785   : > { %v1137_v17 = vmul.f32 %v1136_v16, %v1136_v16 }
 0x787   : > { %v1138_v18 = vsel %vm491_vm0, %v1137_v17, 0.0 }
 0x788   : > { %1139 = vadd.xlane.f32.xlu0 %v1138_v18 }
 0x815   : > { %v1140_v20 = vpop.xlane.xlu0 %1139 }
 0x816   : > { %v1141_v21 = vmul.f32 0.03125, %v1140_v20 }
 0x818   : > { %v1142_v22 = vadd.f32 1e-05, %v1141_v21 }
 0x81a   : > { %1727 = vrsqrt.f32 %v1142_v22 }
 0x824   : > { %v1728_v23 = vpop.eup %1727 }
 0x825   : > { %v1144_v25 = vmul.f32 %v1728_v23, %v1136_v16 }
 0x827   : > { %v1151_v27 = vmul.f32 %v1470_v24, %v1144_v25 }
 0x829   : > { %v1158_v28 = vadd.f32 %v1471_v26, %v1151_v27 }
 0x82b   : > { %v1159_v29 = vpack.c.bf16 %v1158_v28, %v1158_v28 }
 0x82d   : > { %1588 = vmatmul.mubr.msk.bf16.vlgmr.msra.gmra.mrb[20].mxu0 %vm491_vm0, %v1159_v29 }
 0x900   : > { %v1220_v35 = vpop.f32.mrb[20].mxu0 }
 0x901   : > { %v1221_v36 = vadd.f32 %v1472_v34, %v1220_v35  ;;  %v1589_v37 = vpop.f32.mrb[21].mxu0 }
 0x902   : > { %v1223_v38 = vpop.f32.mrb[22].mxu0 }
 0x903   : > { %v1227_v39 = vmul.f32 0.044715, %v1221_v36  ;;  %v1590_v40 = vpop.f32.mrb[23].mxu0  ;;  %v1226_v8 = vmul.f32 0.5, %v1221_v36 }
 0x905   : > { %v1228_v41 = vmul.f32 %v1227_v39, %v1221_v36 }
 0x907   : > { %v1229_v42 = vmul.f32 %v1228_v41, %v1221_v36 }
 0x909   : > { %v1230_v43 = vadd.f32 %v1229_v42, %v1221_v36 }
 0x90b   : > { %v1231_v44 = vmul.f32 0.7978846, %v1230_v43 }
 0x90d   : > { %1729 = vtanh.f32 %v1231_v44 }
 0x917   : > { %v1730_v45 = vpop.eup %1729 }
 0x918   : > { %v1233_v46 = vadd.f32 1.0, %v1730_v45 }
 0x91a   : > { %v1234_v47 = vmul.f32 %v1233_v46, %v1226_v8 }
 0x91c   : > { %v1235_v48 = vpack.c.bf16 %v1234_v47, %v1234_v47 }
 0x91e   : > { %1600 = vmatmul.mubr.msk.bf16.vlgmr.msra.gmra.mrb[20].mxu1 %vm1275_vm8, %v1235_v48 }
 0x9f1   : > { %v1313_v50 = vpop.f32.mrb[20].mxu1 }
 0x9f2   : > { %v1314_v51 = vadd.f32 %v1476_v49, %v1313_v50  ;;  %v1601_v52 = vpop.f32.mrb[21].mxu1 }
 0x9f3   : > { %v1316_v53 = vpop.f32.mrb[22].mxu1 }
 0x9f4   : > { %v1319_v54 = vadd.f32 %v1314_v51, %v2283_v11  ;;  %v1602_v55 = vpop.f32.mrb[23].mxu1 }
 0x9f6   : > { %1320 = vst.msk [vmem:[%s482_s15] sm:$0xff] %vm491_vm0, %v1319_v54 }
 0x9f7   : > { %1856 = shalt.err (!%p1853_p1)
}
 0x9f8   : > { %s1857_s20 = scalar_lea.hbm %s2324_s13, 128  ;;  %s1861_s25 = scalar_lea.hbm %s2410_s24, 256 }
 0x9f9   : > { %p1858_p0 = scmp.ne.s32.totalorder %s2324_s13, %s1857_s20  ;;  %p1862_p9 = scmp.lt.u32.totalorder %s2324_s13, %s2410_s24 }
 0x9fa   : > { %p1863_p12 = scmp.lt.u32.totalorder %s1861_s25, %s1857_s20  ;;  %p1865_p2 = scmp.lt.u32.totalorder %s1857_s20, %s2324_s13 }
 0x9fb   : > { %p1859_p6 = pnand %p1858_p0, %p2411_p3 }
 0x9fc   : > { %p1864_p10 = por %p1863_p12, %p1862_p9 }
 0x9fd   : > { %p1860_p5 = pneg %p1859_p6 }
 0x9fe   : > { %p1866_p4 = por %p1865_p2, %p1864_p10 }
 0xa00   : > { %p1867_p7 = pnand %p1866_p4, %p1860_p5 }
 0xa02   : > { %1870 = shalt.err (!%p1867_p7)
}
 0xa03   : > { %1619 = dma.vmem_to_hbm [thread:$0]  (%p2411_p3), %s2326_s27, 128, %s2324_s13, %s1322_s29  }
 0xa04 PF: > { %s2412_s14 = sld [smem:[#allocation18_spill]]  ;;  %s2413_s22 = sld [smem:[#allocation16_spill]] }
 0xa05   : > { %s2414_s16 = sld [smem:[#allocation21_spill]] }
 0xa0a   : > { %p1646_p8 = scmp.ge.s32.totalorder %s2412_s14, 2  ;;  %s1347_s28 = sand.u32 1, %s2413_s22  }
 0xa0b   : > { %p2415_p11 = scmp.ne.s32.totalorder %s2414_s16, 0  ;;  %s1348_s17 = scalar_lea.sflag [#allocation5], %s1347_s28 }
 0xa0d   : > { %p1635_p13 = pnand %p1646_p8, %p2415_p11 }
 0xa0f   : > { %1900 = dma.done.wait (!%p1635_p13), %s1348_s17, 128  }
 0xa10   : > { %1902 = vsyncadd (!%p1635_p13), %s1348_s17, 4294967168  ;;  %s2416_s28 = sld [smem:[#allocation19_spill]]  ;;  %s2417_s19 = sld [smem:[#allocation17_spill]] }
 0xa11   : > { %s2418_s27 = sld [smem:[#allocation20_spill]]  ;;  %s2419_s25 = smov %s1909_s26 }
 0xa16   : > { %p26_p1 = scmp.ge.s32.totalorder %s2416_s28, 4   ;;  %s2420_s26 = smov %s2417_s19 }
 0xa18   :  { %28 = sbr.rel (!%p26_p1) target bundleno = 8 (0x8), region = 124 }
 0xa1f   :  { %1353 = vsyncpa [#allocation4], 1 }
 0xa20   :  { %1355 = vsyncpa [#allocation4 + $0x1], 1 }
 0xa21   :  { %1356 = vsyncpa [#allocation7], 1 }
 0xa22   :  { %1357 = vsyncpa [#allocation10], 1 }
 0xa23   :  { %1358 = vsyncpa [#allocation5], 1 }
 0xa24   :  { %1360 = vsyncpa [#allocation5 + $0x1], 1 }

// kernel: tpu_custom_call.1
= control target key start
LH: loop header
LB: loop body
LE: loop exit
PB: predicated region body
PF: predicated region fallthrough
CT: control target
= control target key end

     0   :  { %s2367_s0 = inlined_call_operand.vmem [shape: f32[2,8,32], index: 0, kind: input, shape index: {}]   ;;  %s2368_s1 = inlined_call_operand.vmem [shape: f32[1,32], index: 1, kind: input, shape index: {}]   ;;  %s2369_s2 = inlined_call_operand.vmem [shape: f32[1,32], index: 2, kind: input, shape index: {}]   ;;  %s2370_s3 = inlined_call_operand.vmem [shape: bf16[32,96], index: 3, kind: input, shape index: {}]   ;;  %s2371_s4 = inlined_call_operand.hbm [shape: f32[1,96], index: 4, kind: input, shape index: {}]   ;;  %s2372_s5 = inlined_call_operand.vmem [shape: bf16[32,32], index: 5, kind: input, shape index: {}]   ;;  %s2373_s6 = inlined_call_operand.hbm [shape: f32[1,32], index: 6, kind: input, shape index: {}]   ;;  %s2374_s7 = inlined_call_operand.hbm [shape: f32[1,32], index: 7, kind: input, shape index: {}]   ;;  %s2375_s8 = inlined_call_operand.hbm [shape: f32[1,32], index: 8, kind: input, shape index: {}]   ;;  %s2376_s9 = inlined_call_operand.vmem [shape: bf16[32,64], index: 9, kind: input, shape index: {}]   ;;  %s2377_s10 = inlined_call_operand.vmem [shape: f32[1,64], index: 10, kind: input, shape index: {}]   ;;  %s2378_s11 = inlined_call_operand.vmem [shape: bf16[64,32], index: 11, kind: input, shape index: {}]   ;;  %s2379_s12 = inlined_call_operand.vmem [shape: f32[1,32], index: 12, kind: input, shape index: {}]   ;;  %s2380_s13 = inlined_call_operand.hbm [shape: f32[2,8,32], index: 13, kind: output, shape index: {}]  }
   0x1   :  { %2391 = sst [smem:[#allocation22_spill]] %s2380_s13 }
   0x2   :  { %18 = vsyncpa [#allocation4], 0 }
   0x3   :  { %19 = vsyncpa [#allocation7], 0 }
   0x4   :  { %20 = vsyncpa [#allocation10], 0 }
   0x5   :  { %21 = vsyncpa [#allocation5], 0 }
   0x6   :  { %23 = vsyncpa [#allocation5 + $0x1], 0  ;;  %s2010_s25 = smov 0   ;;  %s2012_s26 = smov 0  }
   0x7   :  { %s2014_s27 = smov 0   ;;  %s2016_s28 = smov 0  }
   0x8 LB: > { %2392 = sst [smem:[#allocation16_spill]] %s1905_s25  ;;  %s2031_s29 = sadd.s32 4294967295, %s1917_s28   ;;  %s1917_s28 = sphi %s2016_s28, %s2416_s28   ;;  %s1913_s27 = sphi %s2014_s27, %s2418_s27   ;;  %s1909_s26 = sphi %s2012_s26, %s2420_s26   ;;  %s1905_s25 = sphi %s2010_s25, %s2419_s25  }
   0x9   : > { %2393 = sst [smem:[#allocation17_spill]] %s1913_s27  ;;  %s1435_s30 = sadd.s32 4294967294, %s1917_s28  }
   0xa   : > { %2394 = sst [smem:[#allocation18_spill]] %s1917_s28  ;;  %s2035_s14 = sadd.s32 1, %s1917_s28  }
   0xb   : > { %2395 = sst [smem:[#allocation19_spill]] %s2035_s14  ;;  %s314_s15 = sadd.s32 1, %s1913_s27 }
   0xc   : > { %s311_s16 = ssub.s32 %s1917_s28, %s2035_s14  ;;  %p324_p0 = scmp.ne.s32.totalorder %s1913_s27, %s1909_s26 }
   0xd   : > { %p312_p1 = scmp.eq.s32.totalorder %s311_s16, 0  ;;  %p325_p2 = scmp.eq.s32.totalorder %s2031_s29, 1 }
   0xe   : > { %p330_p3 = scmp.ne.s32.totalorder %s1909_s26, %s1905_s25  ;;  %p331_p4 = scmp.eq.s32.totalorder %s1435_s30, 1 }
   0xf   : > { %s2046_s17 = scalar_select %p312_p1, %s1913_s27, %s314_s15  }
  0x10   : > { %p2048_p5 = por %p325_p2, %p324_p0  ;;  %p2052_p6 = por %p331_p4, %p330_p3 }
  0x11   : > { %2396 = sst [smem:[#allocation20_spill]] %s2046_s17  ;;  %p1436_p7 = scmp.ge.s32.totalorder %s1917_s28, 1 }
  0x12   : > { %s2397_s18 = scalar_select %p2048_p5, 1, 0 }
  0x13   : > { %s2398_s19 = scalar_select %p2052_p6, 1, 0 }
  0x14   : > { %p338_p8 = scmp.lt.s32.totalorder %s1917_s28, 3  ;;  %p2386_p9 = scmp.eq.s32.totalorder %s2031_s29, 0 }
  0x15   : > { %2399 = sst [smem:[#allocation21_spill]] %s2398_s19  ;;  %s1919_s21 = smov [#allocation6]  }
  0x16   : > { %p2059_p10 = pnand %p1436_p7, %p338_p8  ;;  %s374_s22 = sshll.u32 %s1919_s21, 4  ;;  %s375_s22 = int_to_ptr.vmem [resolvable:$true] %s374_s22 }
  0x17   : > { %s1920_s23 = smov [#allocation3]   ;;  %s1921_s15 = smov [#allocation8]  }
  0x18   : > { %s2400_s20 = scalar_select %p2059_p10, 1, 0 }
  0x19   : > { %p1621_p11 = pneg %p2059_p10  ;;  %s360_s24 = sshll.u32 %s1920_s23, 4  ;;  %s2071_s24 = int_to_ptr.vmem [resolvable:$true] %s360_s24 }
  0x1a   : > { %s385_s16 = sshll.u32 %s1921_s15, 4  ;;  %s1731_s21 = scalar_lea.hbm %s2373_s6, 16  ;;  %s2073_s16 = int_to_ptr.vmem [resolvable:$true] %s385_s16 }
  0x1b   : > { %p2067_p12 = pnand %p2386_p9, %p1621_p11  ;;  %p1732_p13 = scmp.ne.s32.totalorder %s2373_s6, %s1731_s21 }
  0x1c   : > { %p1738_p3 = scmp.lt.u32.totalorder %s1731_s21, %s2373_s6 }
  0x1d   : > { %p2083_p0 = pneg %p2067_p12 }
  0x1f   : > { %p1734_p1 = pnand %p2083_p0, %p1732_p13 }
  0x21   : > { %p1735_p2 = pneg %p1734_p1 }
  0x23   : > { %p1740_p4 = pnand %p1738_p3, %p1735_p2 }
  0x25   : > { %1743 = shalt.err (!%p1740_p4)
}
  0x26   : > { %s1744_s27 = scalar_lea.vmem %s375_s22, 16  ;;  %s1751_s14 = scalar_lea.vmem %s375_s22, 32 }
  0x27   : > { %p1745_p7 = scmp.ne.s32.totalorder %s375_s22, %s1744_s27  ;;  %p1752_p9 = scmp.lt.s32.totalorder %s375_s22, %s375_s22 }
  0x28   : > { %p1753_p6 = scmp.lt.s32.totalorder %s1751_s14, %s1744_s27 }
  0x29   : > { %p1747_p8 = pnand %p1745_p7, %p2083_p0 }
  0x2a   : > { %p1754_p5 = por %p1753_p6, %p1752_p9 }
  0x2b   : > { %p1748_p11 = pneg %p1747_p8 }
  0x2d   : > { %p1755_p10 = pnand %p1754_p5, %p1748_p11 }
  0x2f   : > { %1758 = shalt.err (!%p1755_p10)
}
  0x30   : > { %1627 = dma.hbm_to_vmem [thread:$0]  (!%p2067_p12), %s2373_s6, 16, %s375_s22, [#allocation7]  }
  0x31   : > { %s1759_s15 = scalar_lea.hbm %s2371_s4, 16 }
  0x32   : > { %p1760_p13 = scmp.ne.s32.totalorder %s2371_s4, %s1759_s15  ;;  %p1766_p5 = scmp.lt.u32.totalorder %s1759_s15, %s2371_s4 }
  0x34   : > { %p1762_p1 = pnand %p1760_p13, %p2083_p0 }
  0x36   : > { %p1763_p6 = pneg %p1762_p1 }
  0x38   : > { %p1768_p9 = pnand %p1766_p5, %p1763_p6 }
  0x3a   : > { %1771 = shalt.err (!%p1768_p9)
}
  0x3b   : > { %s1772_s22 = scalar_lea.vmem %s2071_s24, 16  ;;  %s1779_s13 = scalar_lea.vmem %s2071_s24, 32 }
  0x3c   : > { %p1773_p10 = scmp.ne.s32.totalorder %s2071_s24, %s1772_s22  ;;  %p1780_p4 = scmp.lt.s32.totalorder %s2071_s24, %s2071_s24 }
  0x3d   : > { %p1781_p7 = scmp.lt.s32.totalorder %s1779_s13, %s1772_s22 }
  0x3e   : > { %p1775_p2 = pnand %p1773_p10, %p2083_p0 }
  0x3f   : > { %p1782_p8 = por %p1781_p7, %p1780_p4 }
  0x40   : > { %p1776_p3 = pneg %p1775_p2 }
  0x42   : > { %p1783_p11 = pnand %p1782_p8, %p1776_p3 }
  0x44   : > { %1786 = shalt.err (!%p1783_p11)
}
  0x45   : > { %1624 = dma.hbm_to_vmem [thread:$0]  (!%p2067_p12), %s2371_s4, 16, %s2071_s24, [#allocation4]  }
  0x46   : > { %s1787_s21 = scalar_lea.hbm %s2374_s7, 16 }
  0x47   : > { %p1788_p13 = scmp.ne.s32.totalorder %s2374_s7, %s1787_s21  ;;  %p1794_p5 = scmp.lt.u32.totalorder %s1787_s21, %s2374_s7 }
  0x49   : > { %p1790_p1 = pnand %p1788_p13, %p2083_p0 }
  0x4b   : > { %p1791_p6 = pneg %p1790_p1 }
  0x4d   : > { %p1796_p9 = pnand %p1794_p5, %p1791_p6 }
  0x4f   : > { %1799 = shalt.err (!%p1796_p9)
}
  0x50   : > { %s1800_s24 = scalar_lea.vmem %s2073_s16, 16  ;;  %s1807_s13 = scalar_lea.vmem %s2073_s16, 32 }
  0x51   : > { %p1801_p10 = scmp.ne.s32.totalorder %s2073_s16, %s1800_s24  ;;  %p1808_p4 = scmp.lt.s32.totalorder %s2073_s16, %s2073_s16 }
  0x52   : > { %p1809_p7 = scmp.lt.s32.totalorder %s1807_s13, %s1800_s24 }
  0x53   : > { %p1803_p2 = pnand %p1801_p10, %p2083_p0 }
  0x54   : > { %p1810_p8 = por %p1809_p7, %p1808_p4 }
  0x55   : > { %p1804_p3 = pneg %p1803_p2 }
  0x57   : > { %p1811_p11 = pnand %p1810_p8, %p1804_p3 }
  0x59   : > { %1814 = shalt.err (!%p1811_p11)
}
  0x5a   : > { %1630 = dma.hbm_to_vmem [thread:$0]  (!%p2067_p12), %s2374_s7, 16, %s2073_s16, [#allocation7]  }
  0x5b   : > { %s1922_s19 = smov [#allocation9]   ;;  %s1815_s27 = scalar_lea.hbm %s2375_s8, 16 }
  0x5c   : > { %s396_s25 = sshll.u32 %s1922_s19, 4  ;;  %p1816_p13 = scmp.ne.s32.totalorder %s2375_s8, %s1815_s27  ;;  %s397_s25 = int_to_ptr.vmem [resolvable:$true] %s396_s25 }
  0x5d   : > { %p1822_p5 = scmp.lt.u32.totalorder %s1815_s27, %s2375_s8 }
  0x5e   : > { %p1818_p1 = pnand %p1816_p13, %p2083_p0 }
  0x60   : > { %p1819_p6 = pneg %p1818_p1 }
  0x62   : > { %p1824_p9 = pnand %p1822_p5, %p1819_p6 }
  0x64   : > { %1827 = shalt.err (!%p1824_p9)
}
  0x65   : > { %s1828_s16 = scalar_lea.vmem %s397_s25, 16  ;;  %s1835_s28 = scalar_lea.vmem %s397_s25, 32 }
  0x66   : > { %p1829_p10 = scmp.ne.s32.totalorder %s397_s25, %s1828_s16  ;;  %p1836_p4 = scmp.lt.s32.totalorder %s397_s25, %s397_s25 }
  0x67   : > { %p1837_p7 = scmp.lt.s32.totalorder %s1835_s28, %s1828_s16 }
  0x68   : > { %p1831_p2 = pnand %p1829_p10, %p2083_p0 }
  0x69   : > { %p1838_p8 = por %p1837_p7, %p1836_p4 }
  0x6a   : > { %p1832_p3 = pneg %p1831_p2 }
  0x6c   : > { %p1839_p11 = pnand %p1838_p8, %p1832_p3 }
  0x6e   : > { %1842 = shalt.err (!%p1839_p11)
}
  0x6f   : > { %1633 = dma.hbm_to_vmem [thread:$0]  (!%p2067_p12), %s2375_s8, 16, %s397_s25, [#allocation10]  }
  0x70   : > { %p2403_p13 = scmp.ne.s32.totalorder %s2400_s20, 0 }
  0x71   : > { %p2404_p1 = scmp.eq.s32.totalorder (!%p2403_p13), %s2031_s29, 0 }
  0x72   : > { %428 = sbr.rel (%p2403_p13) target bundleno = 2564 (0xa04), region = 72 }
  0x79   : > { %1888 = dma.done.wait (%p2404_p1), [#allocation4], 16   ;;  %p2405_p0 = pmov %p2404_p1 }
  0x7b   : > { %1890 = vsyncadd (%p2405_p0), [#allocation4], 4294967280  ;;  %p2406_p6 = pmov %p2405_p0 }
  0x7c   : > { %p2407_p5 = pmov %p2405_p0 }
  0x7d   : > { %1892 = dma.done.wait (%p2406_p6), [#allocation7], 32  }
  0x7e   : > { %1894 = vsyncadd (%p2407_p5), [#allocation7], 4294967264  ;;  %p2408_p9 = pmov %p2405_p0 }
  0x7f   : > { %p2409_p12 = pmov %p2405_p0 }
  0x80   : > { %1896 = dma.done.wait (%p2408_p9), [#allocation10], 16  }
  0x81   : > { %1898 = vsyncadd (%p2409_p12), [#allocation10], 4294967280  ;;  %p483_p10 = scmp.lt.s32.totalorder %s2031_s29, 1  ;;  %vm491_vm0 = vcmask 261120   ;;  %v1699_v7 = vld [vmem:[%s2370_s3] sm:$0xff]   ;;  %v1923_v8 = vmov 0.0  }
  0x82   : > { %1519 = vmatprep.subr.bf16.mxu0 %v1923_v8  ;;  %vm1924_vm1 = vmmov 0   ;;  %v1700_v9 = vld [vmem:[%s2370_s3 + $0x8] sm:$0xff]   ;;  %1527 = vmatprep.subr.bf16.mxu1 %v1923_v8  ;;  %v1449_v14 = vld [vmem:[%s2368_s1] ss:$0 sm:$0xff]  ;;  %v1451_v20 = vld [vmem:[#allocation3] ss:$0 sm:$0xff] }
  0x83   : > { %s484_s20 = scalar_select %p483_p10, %s2031_s29, 1  ;;  %1523 = vmatprep.mubr.msk.bf16.mxu0 %vm1924_vm1, %v1923_v8  ;;  %1520 = vmatpush3.bf16.msra.mxu0 %v1699_v7  ;;  %v1450_v16 = vld [vmem:[%s2369_s2] ss:$0 sm:$0xff]  ;;  %vm593_vm2 = vcmask 64512   ;;  %vm655_vm3 = vcmask 1043456   ;;  %vm702_vm4 = vcmask 60416  }
  0x84   : > { %1521 = vmatprep.subr.bf16.mxu0 %v1923_v8  ;;  %1529 = vmatprep.mubr.msk.bf16.mxu1 %vm1924_vm1, %v1923_v8  ;;  %s1925_s17 = smov 96   ;;  %s1926_s19 = smov 120   ;;  %vm822_vm5 = vcmask 126016   ;;  %vm941_vm6 = vcmask 191616   ;;  %vm1060_vm7 = vcmask 257216   ;;  %vm1275_vm8 = vcmask 523264  }
  0x85   : > { %s1448_s30 = sshll.u32 %s484_s20, 3  ;;  %s1927_s20 = smov 88  }
  0x86   : > { %s486_s21 = scalar_lea.vmem %s2367_s0, %s1448_s30  ;;  %s1928_s30 = smov 80  }
  0x87   : > { %v2184_v0 = vld [vmem:[%s486_s21] sm:$0xff]  ;;  %1522 = vmatpush3.bf16.msra.mxu0 %v1700_v9  ;;  %s1929_s23 = smov 112   ;;  %s1930_s25 = smov 72  }
  0x88   : > { %v492_v1 = vsel %vm491_vm0, %v2184_v0, 0.0  ;;  %1533 = vmatprep.subr.bf16.mxu0 %v1923_v8  ;;  %s1931_s21 = smov 104   ;;  %s1932_s15 = smov 64  }
  0x89   : > { %493 = vadd.xlane.f32.xlu0 %v492_v1  ;;  %s1933_s27 = smov 56   ;;  %s1934_s14 = smov 48  }
  0x8a   : > { %s1935_s22 = smov 40   ;;  %s1936_s24 = smov 8  }
  0x8b   : > { %p2411_p3 = scmp.ne.s32.totalorder %s2397_s18, 0  ;;  %s1939_s28 = smov [#allocation11]  }
 0x116   : > { %v494_v2 = vpop.xlane.xlu0 %493 }
 0x117   : > { %v496_v3 = vmul.f32 0.03125, %v494_v2 }
 0x119   : > { %v497_v4 = vsub.f32 %v2184_v0, %v496_v3 }
 0x11b   : > { %v498_v5 = vmul.f32 %v497_v4, %v497_v4 }
 0x11d   : > { %v499_v6 = vsel %vm491_vm0, %v498_v5, 0.0 }
 0x11e   : > { %500 = vadd.xlane.f32.xlu0 %v499_v6 }
 0x1ab   : > { %v501_v10 = vpop.xlane.xlu0 %500 }
 0x1ac   : > { %v502_v11 = vmul.f32 0.03125, %v501_v10 }
 0x1ae   : > { %v503_v12 = vadd.f32 1e-05, %v502_v11 }
 0x1b0   : > { %1709 = vrsqrt.f32 %v503_v12 }
 0x1ba   : > { %v1710_v13 = vpop.eup %1709 }
 0x1bb   : > { %v505_v15 = vmul.f32 %v1710_v13, %v497_v4 }
 0x1bd   : > { %v512_v17 = vmul.f32 %v1449_v14, %v505_v15 }
 0x1bf   : > { %v519_v18 = vadd.f32 %v1450_v16, %v512_v17 }
 0x1c1   : > { %v520_v19 = vpack.c.bf16 %v519_v18, %v519_v18 }
 0x1c3   : > { %1524 = vmatmul.mubr.msk.bf16.vlgmr.msra.gmra.mrb[0].mxu0 %vm491_vm0, %v520_v19 }
 0x1c4   : > { %1535 = vmatprep.mubr.msk.bf16.mxu0 %vm1924_vm1, %v1923_v8 }
 0x296   : > { %v581_v21 = vpop.f32.mrb[0].mxu0 }
 0x297   : > { %v582_v22 = vadd.f32 %v1451_v20, %v581_v21  ;;  %v1525_v23 = vpop.f32.mrb[1].mxu0 }
 0x298   : > { %v584_v24 = vpop.f32.mrb[2].mxu0 }
 0x299   : > { %v587_v25 = vmul.f32 0.35355338, %v582_v22  ;;  %v2213_v26 = vpack.c.bf16 %v582_v22, %v582_v22  ;;  %v1526_v27 = vpop.f32.mrb[3].mxu0 }
 0x29b   : > { %v588_v28 = vpack.c.bf16 %v587_v25, %v587_v25  ;;  %591 = vrot.lane.b32.xlu1 %v2213_v26, %s1925_s17  ;;  %s1847_s17 = sshll.u32 %s1939_s28, 4  ;;  %s1848_s17 = int_to_ptr.vmem [resolvable:$false] %s1847_s17 }
 0x29d   : > { %705 = vrot.lane.b32.xlu0 %v588_v28, %s1926_s19  ;;  %s1937_s19 = smov 16  }
 0x29f   : > { %707 = vrot.lane.b32.xlu1 %v2213_v26, %s1927_s20  ;;  %s1938_s20 = smov 24  }
 0x2a3   : > { %826 = vrot.lane.b32.xlu1 %v2213_v26, %s1928_s30 }
 0x2a7   : > { %824 = vrot.lane.b32.xlu1 %v588_v28, %s1929_s23 }
 0x2ab   : > { %945 = vrot.lane.b32.xlu1 %v2213_v26, %s1930_s25 }
 0x2af   : > { %943 = vrot.lane.b32.xlu1 %v588_v28, %s1931_s21  ;;  %s1483_s21 = sshll.u32 %s2031_s29, 7 }
 0x30d   : > { %v592_v29 = vpop.permute.xlu1 %591 }
 0x30e   : > { %v598_v30 = vsel %vm593_vm2, %v592_v29, 0 }
 0x30f   : > { %1528 = vmatpush3.bf16.xpose.msra.mxu1 %v598_v30  ;;  %v706_v34 = vpop.permute.xlu0 %705 }
 0x310   : > { %1539 = vmatprep.subr.bf16.mxu1 %v1923_v8 }
 0x311   : > { %v708_v31 = vpop.permute.xlu1 %707 }
 0x312   : > { %v713_v32 = vsel %vm593_vm2, %v708_v31, 0 }
 0x315   : > { %v827_v33 = vpop.permute.xlu1 %826 }
 0x316   : > { %1530 = vmatmul.mubr.msk.bf16.vlgmr.msra.gmra.mrb[0].mxu1 %vm593_vm2, %v588_v28  ;;  %v832_v36 = vsel %vm593_vm2, %v827_v33, 0 }
 0x317   : > { %1540 = vmatpush3.bf16.xpose.msra.mxu1 %v713_v32  ;;  %1541 = vmatprep.mubr.msk.bf16.mxu1 %vm1924_vm1, %v1923_v8 }
 0x318   : > { %1551 = vmatprep.subr.bf16.mxu1 %v1923_v8 }
 0x319   : > { %v825_v35 = vpop.permute.xlu1 %824 }
 0x31d   : > { %v946_v37 = vpop.permute.xlu1 %945 }
 0x31e   : > { %1542 = vmatmul.mubr.msk.bf16.vlgmr.msra.gmra.mrb[4].mxu1 %vm593_vm2, %v706_v34  ;;  %v951_v38 = vsel %vm593_vm2, %v946_v37, 0 }
 0x31f   : > { %1552 = vmatpush3.bf16.xpose.msra.mxu1 %v832_v36  ;;  %1553 = vmatprep.mubr.msk.bf16.mxu1 %vm1924_vm1, %v1923_v8 }
 0x320   : > { %1563 = vmatprep.subr.bf16.mxu1 %v1923_v8 }
 0x321   : > { %v944_v39 = vpop.permute.xlu1 %943 }
 0x326   : > { %1554 = vmatmul.mubr.msk.bf16.vlgmr.msra.gmra.mrb[8].mxu1 %vm593_vm2, %v825_v35 }
 0x327   : > { %1564 = vmatpush3.bf16.xpose.msra.mxu1 %v951_v38  ;;  %1565 = vmatprep.mubr.msk.bf16.mxu1 %vm1924_vm1, %v1923_v8 }
 0x328   : > { %1575 = vmatprep.subr.bf16.mxu1 %v1923_v8 }
 0x32e   : > { %1566 = vmatmul.mubr.msk.bf16.vlgmr.msra.gmra.mrb[12].mxu1 %vm593_vm2, %v944_v39 }
 0x32f   : > { %1579 = vmatprep.mubr.msk.bf16.mxu1 %vm1924_vm1, %v1923_v8 }
 0x3e9   : > { %v634_v40 = vpop.f32.mrb[0].mxu1 }
 0x3ea   : > { %v1531_v41 = vpop.f32.mrb[1].mxu1  ;;  %v640_v42 = vsel %vm593_vm2, %v634_v40, -inf }
 0x3eb   : > { %641 = vmax.xlane.f32.xlu1 %v640_v42  ;;  %v637_v43 = vpop.f32.mrb[2].mxu1 }
 0x3ec   : > { %v1532_v44 = vpop.f32.mrb[3].mxu1 }
 0x3f1   : > { %v749_v45 = vpop.f32.mrb[4].mxu1 }
 0x3f2   : > { %v1543_v46 = vpop.f32.mrb[5].mxu1  ;;  %v755_v47 = vsel %vm593_vm2, %v749_v45, -inf }
 0x3f3   : > { %756 = vmax.xlane.f32.xlu0 %v755_v47  ;;  %v752_v48 = vpop.f32.mrb[6].mxu1 }
 0x3f4   : > { %v1544_v49 = vpop.f32.mrb[7].mxu1 }
 0x3f9   : > { %v868_v50 = vpop.f32.mrb[8].mxu1 }
 0x3fa   : > { %v1555_v51 = vpop.f32.mrb[9].mxu1  ;;  %v874_v59 = vsel %vm593_vm2, %v868_v50, -inf }
 0x3fb   : > { %v871_v52 = vpop.f32.mrb[10].mxu1 }
 0x3fc   : > { %650 = vrot.lane.b32.xlu1 %v2213_v26, %s1932_s15  ;;  %v1556_v53 = vpop.f32.mrb[11].mxu1 }
 0x401   : > { %v987_v54 = vpop.f32.mrb[12].mxu1 }
 0x402   : > { %v1567_v55 = vpop.f32.mrb[13].mxu1  ;;  %v993_v56 = vsel %vm593_vm2, %v987_v54, -inf }
 0x403   : > { %994 = vmax.xlane.f32.xlu0 %v993_v56  ;;  %v990_v57 = vpop.f32.mrb[14].mxu1 }
 0x404   : > { %v1568_v58 = vpop.f32.mrb[15].mxu1 }
 0x419   : > { %765 = vrot.lane.b32.xlu0 %v2213_v26, %s1933_s27 }
 0x420   : > { %875 = vmax.xlane.f32.xlu1 %v874_v59 }
 0x431   : > { %884 = vrot.lane.b32.xlu1 %v2213_v26, %s1934_s14 }
 0x435   : > { %1003 = vrot.lane.b32.xlu1 %v2213_v26, %s1935_s22 }
 0x478   : > { %v642_v60 = vpop.xlane.xlu1 %641 }
 0x479   : > { %v643_v61 = vsub.f32 %v634_v40, %v642_v60 }
 0x47b   : > { %v644_v62 = vmul.f32 1.442695, %v643_v61 }
 0x47c   : > { %v651_v63 = vpop.permute.xlu1 %650 }
 0x47d   : > { %1711 = vpow2.f32 %v644_v62  ;;  %v657_v1 = vsel %vm655_vm3, %v651_v63, 0 }
 0x47e   : > { %1534 = vmatpush3.bf16.msra.mxu0 %v657_v1 }
 0x47f   : > { %1545 = vmatprep.subr.bf16.mxu0 %v1923_v8 }
 0x480   : > { %v757_v2 = vpop.xlane.xlu0 %756 }
 0x481   : > { %v758_v3 = vsub.f32 %v749_v45, %v757_v2 }
 0x483   : > { %v759_v4 = vmul.f32 1.442695, %v758_v3 }
 0x485   : > { %1713 = vpow2.f32 %v759_v4 }
 0x487   : > { %v1712_v5 = vpop.eup %1711 }
 0x488   : > { %v649_v6 = vpack.c.bf16 %v1712_v5, %v1712_v5  ;;  %v646_v18 = vsel %vm593_vm2, %v1712_v5, 0.0  ;;  %v1466_v5 = vld [vmem:[#allocation6] ss:$0 sm:$0xff] }
 0x48a   : > { %1536 = vmatmul.mubr.msk.bf16.vlgmr.msra.gmra.mrb[4].mxu0 %vm593_vm2, %v649_v6 }
 0x48b   : > { %1547 = vmatprep.mubr.msk.bf16.mxu0 %vm1924_vm1, %v1923_v8 }
 0x48f   : > { %v1714_v7 = vpop.eup %1713 }
 0x490   : > { %v995_v9 = vpop.xlane.xlu0 %994  ;;  %v761_v10 = vsel %vm593_vm2, %v1714_v7, 0.0  ;;  %v764_v15 = vpack.c.bf16 %v1714_v7, %v1714_v7 }
 0x491   : > { %v996_v11 = vsub.f32 %v987_v54, %v995_v9  ;;  %762 = vadd.xlane.f32.xlu0 %v761_v10  ;;  %v1702_v54 = vld [vmem:[%s2372_s5 + $0x8] sm:$0xff]  }
 0x493   : > { %v997_v12 = vmul.f32 1.442695, %v996_v11 }
 0x494   : > { %v766_v13 = vpop.permute.xlu0 %765 }
 0x495   : > { %1715 = vpow2.f32 %v997_v12  ;;  %v771_v14 = vsel %vm655_vm3, %v766_v13, 0 }
 0x496   : > { %1546 = vmatpush3.bf16.msra.mxu0 %v771_v14 }
 0x497   : > { %1557 = vmatprep.subr.bf16.mxu0 %v1923_v8 }
 0x499   : > { %1548 = vmatmul.mubr.msk.bf16.vlgmr.msra.gmra.mrb[8].mxu0 %vm593_vm2, %v764_v15 }
 0x49a   : > { %1559 = vmatprep.mubr.msk.bf16.mxu0 %vm1924_vm1, %v1923_v8 }
 0x49f   : > { %v1716_v16 = vpop.eup %1715 }
 0x4a0   : > { %v999_v17 = vsel %vm593_vm2, %v1716_v16, 0.0  ;;  %v1002_v29 = vpack.c.bf16 %v1716_v16, %v1716_v16 }
 0x4a1   : > { %1000 = vadd.xlane.f32.xlu0 %v999_v17 }
 0x4a5   : > { %647 = vadd.xlane.f32.xlu0 %v646_v18 }
 0x4ad   : > { %v876_v19 = vpop.xlane.xlu1 %875 }
 0x4ae   : > { %v877_v20 = vsub.f32 %v868_v50, %v876_v19  ;;  %v1701_v50 = vld [vmem:[%s2372_s5] sm:$0xff]  }
 0x4af   : > { %1576 = vmatpush3.bf16.msra.mxu1 %v1701_v50  ;;  %v1703_v19 = vld [vmem:[%s2376_s9] sm:$0xff]  }
 0x4b0   : > { %v878_v21 = vmul.f32 1.442695, %v877_v20  ;;  %1577 = vmatprep.subr.bf16.mxu1 %v1923_v8 }
 0x4b1   : > { %v885_v22 = vpop.permute.xlu1 %884 }
 0x4b2   : > { %1717 = vpow2.f32 %v878_v21  ;;  %v890_v23 = vsel %vm655_vm3, %v885_v22, 0 }
 0x4b3   : > { %1558 = vmatpush3.bf16.msra.mxu0 %v890_v23  ;;  %1578 = vmatpush3.bf16.msra.mxu1 %v1702_v54 }
 0x4b4   : > { %1569 = vmatprep.subr.bf16.mxu0 %v1923_v8  ;;  %1591 = vmatprep.subr.bf16.mxu1 %v1923_v8 }
 0x4b5   : > { %v1004_v25 = vpop.permute.xlu1 %1003 }
 0x4b6   : > { %v1009_v28 = vsel %vm655_vm3, %v1004_v25, 0 }
 0x4bc   : > { %v1718_v24 = vpop.eup %1717 }
 0x4bd   : > { %v880_v26 = vsel %vm593_vm2, %v1718_v24, 0.0  ;;  %v883_v27 = vpack.c.bf16 %v1718_v24, %v1718_v24  ;;  %v1470_v24 = vld [vmem:[#allocation8] ss:$0 sm:$0xff] }
 0x4be   : > { %881 = vadd.xlane.f32.xlu1 %v880_v26  ;;  %v1471_v26 = vld [vmem:[#allocation9] ss:$0 sm:$0xff] }
 0x4bf   : > { %1560 = vmatmul.mubr.msk.bf16.vlgmr.msra.gmra.mrb[12].mxu0 %vm593_vm2, %v883_v27 }
 0x4c0   : > { %1570 = vmatpush3.bf16.msra.mxu0 %v1009_v28  ;;  %1571 = vmatprep.mubr.msk.bf16.mxu0 %vm1924_vm1, %v1923_v8 }
 0x4c1   : > { %1583 = vmatprep.subr.bf16.mxu0 %v1923_v8 }
 0x4c7   : > { %1572 = vmatmul.mubr.msk.bf16.vlgmr.msra.gmra.mrb[16].mxu0 %vm593_vm2, %v1002_v29 }
 0x4c8   : > { %1587 = vmatprep.mubr.msk.bf16.mxu0 %vm1924_vm1, %v1923_v8  ;;  %1584 = vmatpush3.bf16.msra.mxu0 %v1703_v19 }
 0x4c9   : > { %1585 = vmatprep.subr.bf16.mxu0 %v1923_v8 }
 0x51e   : > { %v763_v30 = vpop.xlane.xlu0 %762 }
 0x52e   : > { %v1001_v31 = vpop.xlane.xlu0 %1000 }
 0x532   : > { %v648_v32 = vpop.xlane.xlu0 %647 }
 0x533   : > { %1719 = vrcp.f32 %v648_v32  ;;  %v1707_v32 = vld [vmem:[%s2378_s11 + $0x10] sm:$0xff]  }
 0x534   : > { %1721 = vrcp.f32 %v763_v30  ;;  %v1705_v30 = vld [vmem:[%s2378_s11] sm:$0xff]  }
 0x53d   : > { %v1720_v33 = vpop.eup %1719 }
 0x53e   : > { %v1722_v40 = vpop.eup %1721 }
 0x54b   : > { %v882_v47 = vpop.xlane.xlu1 %881 }
 0x54c   : > { %1723 = vrcp.f32 %v882_v47 }
 0x54d   : > { %1725 = vrcp.f32 %v1001_v31  ;;  %v1706_v31 = vld [vmem:[%s2378_s11 + $0x8] sm:$0xff]  }
 0x556   : > { %v1724_v48 = vpop.eup %1723 }
 0x557   : > { %v1726_v57 = vpop.eup %1725 }
 0x55d   : > { %v693_v34 = vpop.f32.mrb[4].mxu0 }
 0x55e   : > { %v700_v35 = vmul.f32 %v1720_v33, %v693_v34  ;;  %v1537_v36 = vpop.f32.mrb[5].mxu0  ;;  %v1708_v33 = vld [vmem:[%s2378_s11 + $0x18] sm:$0xff]   ;;  %v1472_v34 = vld [vmem:[%s2377_s10] ss:$0 sm:$0xff] }
 0x55f   : > { %v696_v37 = vpop.f32.mrb[6].mxu0 }
 0x560   : > { %v701_v38 = vpack.c.bf16 %v700_v35, %v700_v35  ;;  %v1538_v39 = vpop.f32.mrb[7].mxu0 }
 0x562   : > { %703 = vst.msk [vmem:[#allocation2] sm:$0xf] %vm702_vm4, %v701_v38 }
 0x56c   : > { %v807_v41 = vpop.f32.mrb[8].mxu0 }
 0x56d   : > { %v814_v42 = vmul.f32 %v1722_v40, %v807_v41  ;;  %v1549_v43 = vpop.f32.mrb[9].mxu0 }
 0x56e   : > { %v810_v44 = vpop.f32.mrb[10].mxu0 }
 0x56f   : > { %v1486_v45 = vpack.c.bf16 %v814_v42, %v814_v42  ;;  %v1550_v46 = vpop.f32.mrb[11].mxu0 }
 0x571   : > { %819 = vrot.lane.b32.xlu1 %v1486_v45, %s1936_s24  ;;  %s2410_s24 = sld [smem:[#allocation22_spill]] }
 0x577   : > { %s2324_s13 = scalar_lea.hbm %s2410_s24, %s1483_s21 }
 0x592   : > { %v926_v49 = vpop.f32.mrb[12].mxu0 }
 0x593   : > { %v933_v51 = vmul.f32 %v1724_v48, %v926_v49  ;;  %v1561_v52 = vpop.f32.mrb[13].mxu0  ;;  %v1476_v49 = vld [vmem:[%s2379_s12] ss:$0 sm:$0xff] }
 0x594   : > { %v929_v53 = vpop.f32.mrb[14].mxu0 }
 0x595   : > { %v1487_v55 = vpack.c.bf16 %v933_v51, %v933_v51  ;;  %v1562_v56 = vpop.f32.mrb[15].mxu0 }
 0x597   : > { %938 = vrot.lane.b32.xlu0 %v1487_v55, %s1937_s19  ;;  %s1849_s19 = scalar_lea.vmem %s1848_s17, 256 }
 0x59a   : > { %v1045_v58 = vpop.f32.mrb[16].mxu0 }
 0x59b   : > { %v1052_v59 = vmul.f32 %v1726_v57, %v1045_v58  ;;  %v1573_v60 = vpop.f32.mrb[17].mxu0 }
 0x59c   : > { %v1048_v61 = vpop.f32.mrb[18].mxu0 }
 0x59d   : > { %v1488_v62 = vpack.c.bf16 %v1052_v59, %v1052_v59  ;;  %v1574_v63 = vpop.f32.mrb[19].mxu0 }
 0x59f   : > { %1057 = vrot.lane.b32.xlu1 %v1488_v62, %s1938_s20  ;;  %s480_s20 = sand.u32 1, %s1909_s26  }
 0x5a0   : > { %s1447_s30 = sshll.u32 %s480_s20, 3  ;;  %s1322_s29 = scalar_lea.sflag [#allocation5], %s480_s20 }
 0x5a1   : > { %s482_s15 = scalar_lea.vmem [#allocation11], %s1447_s30 }
 0x5a2   : > { %s1335_s27 = sshll.u32 %s482_s15, 4  ;;  %s2326_s27 = int_to_ptr.vmem [resolvable:$true] %s1335_s27 }
 0x5a3   : > { %s1843_s16 = scalar_lea.vmem %s2326_s27, 128  ;;  %p1850_p8 = scmp.lt.s32.totalorder %s2326_s27, %s1848_s17 }
 0x5a4   : > { %p1844_p2 = scmp.ne.s32.totalorder %s2326_s27, %s1843_s16  ;;  %p1851_p11 = scmp.lt.s32.totalorder %s1849_s19, %s1843_s16 }
 0x5a6   : > { %p1845_p4 = pnand %p1844_p2, %p2411_p3  ;;  %p1852_p13 = por %p1851_p11, %p1850_p8 }
 0x5a8   : > { %p1846_p7 = pneg %p1845_p4 }
 0x5aa   : > { %p1853_p1 = pnand %p1852_p13, %p1846_p7 }
 0x5e3   : > { %v820_v1 = vpop.permute.xlu1 %819 }
 0x5e4   : > { %823 = vst.msk [vmem:[#allocation2] sm:$0xf] %vm822_vm5, %v820_v1 }
 0x609   : > { %v939_v2 = vpop.permute.xlu0 %938 }
 0x60a   : > { %942 = vst.msk [vmem:[#allocation2] sm:$0xf] %vm941_vm6, %v939_v2 }
 0x611   : > { %v1058_v3 = vpop.permute.xlu1 %1057 }
 0x612   : > { %1061 = vst.msk [vmem:[#allocation2] sm:$0xf] %vm1060_vm7, %v1058_v3 }
 0x619   : > { %v1062_v4 = vld [vmem:[#allocation2] sm:$0xf] }
 0x61a   : > { %1580 = vmatmul.mubr.msk.bf16.vlgmr.msra.gmra.mrb[16].mxu1 %vm491_vm0, %v1062_v4 }
 0x61b   : > { %1599 = vmatprep.mubr.msk.bf16.mxu1 %vm1924_vm1, %v1923_v8  ;;  %1592 = vmatpush3.bf16.msra.mxu1 %v1705_v30 }
 0x61c   : > { %1593 = vmatprep.subr.bf16.mxu1 %v1923_v8 }
 0x61f   : > { %1594 = vmatpush3.bf16.msra.mxu1 %v1706_v31 }
 0x620   : > { %1595 = vmatprep.subr.bf16.mxu1 %v1923_v8 }
 0x623   : > { %1596 = vmatpush3.bf16.msra.mxu1 %v1707_v32 }
 0x624   : > { %1597 = vmatprep.subr.bf16.mxu1 %v1923_v8 }
 0x627   : > { %1598 = vmatpush3.bf16.msra.mxu1 %v1708_v33 }
 0x6ed   : > { %v1123_v6 = vpop.f32.mrb[16].mxu1 }
 0x6ee   : > { %v1124_v7 = vadd.f32 %v1466_v5, %v1123_v6  ;;  %v1581_v9 = vpop.f32.mrb[17].mxu1 }
 0x6ef   : > { %v1126_v10 = vpop.f32.mrb[18].mxu1 }
 0x6f0   : > { %v2283_v11 = vadd.f32 %v1124_v7, %v2184_v0  ;;  %v1582_v12 = vpop.f32.mrb[19].mxu1  ;;  %v1704_v0 = vld [vmem:[%s2376_s9 + $0x8] sm:$0xff]  }
 0x6f1   : > { %1586 = vmatpush3.bf16.msra.mxu0 %v1704_v0 }
 0x6f2   : > { %v1132_v13 = vsel %vm491_vm0, %v2283_v11, 0.0 }
 0x6f3   : > { %1133 = vadd.xlane.f32.xlu1 %v1132_v13 }
 0x780   : > { %v1134_v14 = vpop.xlane.xlu1 %1133 }
 0x781   : > { %v1135_v15 = vmul.f32 0.03125, %v1134_v14 }
 0x783   : > { %v1136_v16 = vsub.f32 %v2283_v11, %v1135_v15 }
 0x785   : > { %v1137_v17 = vmul.f32 %v1136_v16, %v1136_v16 }
 0x787   : > { %v1138_v18 = vsel %vm491_vm0, %v1137_v17, 0.0 }
 0x788   : > { %1139 = vadd.xlane.f32.xlu0 %v1138_v18 }
 0x815   : > { %v1140_v20 = vpop.xlane.xlu0 %1139 }
 0x816   : > { %v1141_v21 = vmul.f32 0.03125, %v1140_v20 }
 0x818   : > { %v1142_v22 = vadd.f32 1e-05, %v1141_v21 }
 0x81a   : > { %1727 = vrsqrt.f32 %v1142_v22 }
 0x824   : > { %v1728_v23 = vpop.eup %1727 }
 0x825   : > { %v1144_v25 = vmul.f32 %v1728_v23, %v1136_v16 }
 0x827   : > { %v1151_v27 = vmul.f32 %v1470_v24, %v1144_v25 }
 0x829   : > { %v1158_v28 = vadd.f32 %v1471_v26, %v1151_v27 }
 0x82b   : > { %v1159_v29 = vpack.c.bf16 %v1158_v28, %v1158_v28 }
 0x82d   : > { %1588 = vmatmul.mubr.msk.bf16.vlgmr.msra.gmra.mrb[20].mxu0 %vm491_vm0, %v1159_v29 }
 0x900   : > { %v1220_v35 = vpop.f32.mrb[20].mxu0 }
 0x901   : > { %v1221_v36 = vadd.f32 %v1472_v34, %v1220_v35  ;;  %v1589_v37 = vpop.f32.mrb[21].mxu0 }
 0x902   : > { %v1223_v38 = vpop.f32.mrb[22].mxu0 }
 0x903   : > { %v1227_v39 = vmul.f32 0.044715, %v1221_v36  ;;  %v1590_v40 = vpop.f32.mrb[23].mxu0  ;;  %v1226_v8 = vmul.f32 0.5, %v1221_v36 }
 0x905   : > { %v1228_v41 = vmul.f32 %v1227_v39, %v1221_v36 }
 0x907   : > { %v1229_v42 = vmul.f32 %v1228_v41, %v1221_v36 }
 0x909   : > { %v1230_v43 = vadd.f32 %v1229_v42, %v1221_v36 }
 0x90b   : > { %v1231_v44 = vmul.f32 0.7978846, %v1230_v43 }
 0x90d   : > { %1729 = vtanh.f32 %v1231_v44 }
 0x917   : > { %v1730_v45 = vpop.eup %1729 }
 0x918   : > { %v1233_v46 = vadd.f32 1.0, %v1730_v45 }
 0x91a   : > { %v1234_v47 = vmul.f32 %v1233_v46, %v1226_v8 }
 0x91c   : > { %v1235_v48 = vpack.c.bf16 %v1234_v47, %v1234_v47 }
 0x91e   : > { %1600 = vmatmul.mubr.msk.bf16.vlgmr.msra.gmra.mrb[20].mxu1 %vm1275_vm8, %v1235_v48 }
 0x9f1   : > { %v1313_v50 = vpop.f32.mrb[20].mxu1 }
 0x9f2   : > { %v1314_v51 = vadd.f32 %v1476_v49, %v1313_v50  ;;  %v1601_v52 = vpop.f32.mrb[21].mxu1 }
 0x9f3   : > { %v1316_v53 = vpop.f32.mrb[22].mxu1 }
 0x9f4   : > { %v1319_v54 = vadd.f32 %v1314_v51, %v2283_v11  ;;  %v1602_v55 = vpop.f32.mrb[23].mxu1 }
 0x9f6   : > { %1320 = vst.msk [vmem:[%s482_s15] sm:$0xff] %vm491_vm0, %v1319_v54 }
 0x9f7   : > { %1856 = shalt.err (!%p1853_p1)
}
 0x9f8   : > { %s1857_s20 = scalar_lea.hbm %s2324_s13, 128  ;;  %s1861_s25 = scalar_lea.hbm %s2410_s24, 256 }
 0x9f9   : > { %p1858_p0 = scmp.ne.s32.totalorder %s2324_s13, %s1857_s20  ;;  %p1862_p9 = scmp.lt.u32.totalorder %s2324_s13, %s2410_s24 }
 0x9fa   : > { %p1863_p12 = scmp.lt.u32.totalorder %s1861_s25, %s1857_s20  ;;  %p1865_p2 = scmp.lt.u32.totalorder %s1857_s20, %s2324_s13 }
 0x9fb   : > { %p1859_p6 = pnand %p1858_p0, %p2411_p3 }
 0x9fc   : > { %p1864_p10 = por %p1863_p12, %p1862_p9 }
 0x9fd   : > { %p1860_p5 = pneg %p1859_p6 }
 0x9fe   : > { %p1866_p4 = por %p1865_p2, %p1864_p10 }
 0xa00   : > { %p1867_p7 = pnand %p1866_p4, %p1860_p5 }
 0xa02   : > { %1870 = shalt.err (!%p1867_p7)
}
 0xa03   : > { %1619 = dma.vmem_to_hbm [thread:$0]  (%p2411_p3), %s2326_s27, 128, %s2324_s13, %s1322_s29  }
 0xa04 PF: > { %s2412_s14 = sld [smem:[#allocation18_spill]]  ;;  %s2413_s22 = sld [smem:[#allocation16_spill]] }
 0xa05   : > { %s2414_s16 = sld [smem:[#allocation21_spill]] }
 0xa0a   : > { %p1646_p8 = scmp.ge.s32.totalorder %s2412_s14, 2  ;;  %s1347_s28 = sand.u32 1, %s2413_s22  }
 0xa0b   : > { %p2415_p11 = scmp.ne.s32.totalorder %s2414_s16, 0  ;;  %s1348_s17 = scalar_lea.sflag [#allocation5], %s1347_s28 }
 0xa0d   : > { %p1635_p13 = pnand %p1646_p8, %p2415_p11 }
 0xa0f   : > { %1900 = dma.done.wait (!%p1635_p13), %s1348_s17, 128  }
 0xa10   : > { %1902 = vsyncadd (!%p1635_p13), %s1348_s17, 4294967168  ;;  %s2416_s28 = sld [smem:[#allocation19_spill]]  ;;  %s2417_s19 = sld [smem:[#allocation17_spill]] }
 0xa11   : > { %s2418_s27 = sld [smem:[#allocation20_spill]]  ;;  %s2419_s25 = smov %s1909_s26 }
 0xa16   : > { %p26_p1 = scmp.ge.s32.totalorder %s2416_s28, 4   ;;  %s2420_s26 = smov %s2417_s19 }
 0xa18   :  { %28 = sbr.rel (!%p26_p1) target bundleno = 8 (0x8), region = 124 }
 0xa1f   :  { %1353 = vsyncpa [#allocation4], 1 }
 0xa20   :  { %1355 = vsyncpa [#allocation4 + $0x1], 1 }
 0xa21   :  { %1356 = vsyncpa [#allocation7], 1 }
 0xa22   :  { %1357 = vsyncpa [#allocation10], 1 }
 0xa23   :  { %1358 = vsyncpa [#allocation5], 1 }
 0xa24   :  { %1360 = vsyncpa [#allocation5 + $0x1], 1 }

</bundles_post_ra>
